<compile_context>
chip_gen: v5e
topology: v5e:2x2
jax: 0.10.0
libtpu: 0.0.40
codegen_flags: <defaults>
</compile_context>

<pallas_src>
import jax
import jax.numpy as jnp
from jax.experimental import pallas as pl
from jax.experimental.pallas import tpu as pltpu

IN_DIM = 512
OUT_DIM = 768
EPS = 1e-5  # nn.LayerNorm default eps


def _round_up(n, m):
    return ((n + m - 1) // m) * m


def feature_projection_kernel(x_ref, w_ref, b_ref, o_ref):
    """x_ref: (TM, 512); w_ref: (512, 768) gamma-folded W^T; b_ref: (1, 768); o_ref: (TM, 768)."""
    x = x_ref[...]
    if x.dtype != jnp.float32:          # trace-time no-op for f32 inputs
        x = x.astype(jnp.float32)

    # --- LayerNorm statistics (biased variance), f32 math — matches nn.LayerNorm ---
    mu = jnp.mean(x, axis=-1, keepdims=True)
    xc = x - mu
    var = jnp.mean(xc * xc, axis=-1, keepdims=True)
    xn = xc * jax.lax.rsqrt(var + EPS)          # gamma/beta are folded into W'/b'

    # --- Projection: standardized x @ W' + b' (f32 accumulation on the MXU) ---
    xn = xn.astype(w_ref.dtype)                 # single cast at the dot (bf16 path)
    y = jnp.dot(xn, w_ref[...], preferred_element_type=jnp.float32)
    y = y + b_ref[...]

    # Dropout(0.1) == identity at inference.
    o_ref[...] = y.astype(o_ref.dtype)


def feature_projection(x, ln_weight, ln_bias, proj_weight, proj_bias, *,
                       row_tile=512, use_bf16_matmul=False, out_dtype=None):
    """Mirrors FeatureProjection.forward (eval mode).

    x:           (B, S, 512)
    ln_weight:   (512,)      LayerNorm gamma
    ln_bias:     (512,)      LayerNorm beta
    proj_weight: (768, 512)  nn.Linear weight (PyTorch layout)
    proj_bias:   (768,)
    returns:     (B, S, 768)

    row_tile: rows of the flattened (B*S, 512) token matrix per grid step.
      512 fits the 16 MiB v5e scoped-VMEM default in f32; raise (and set
      vmem_limit_bytes) only if profiling shows exposed DMA on v6e/v7x.
    use_bf16_matmul: cast W' and the standardized activations to bf16 for the MXU
      (f32 accumulation).  ~1e-2-level deviation from the f32 PyTorch reference.
    """
    B, S, D = x.shape
    assert D == IN_DIM and proj_weight.shape == (OUT_DIM, IN_DIM)

    tokens = B * S
    x2 = x.reshape(tokens, D)                       # free metadata reshape, no copy

    # ---- Host-side, one-time parameter prep: fold LN affine into the projection ----
    w_t = proj_weight.T.astype(jnp.float32)                          # (512, 768)
    w_f = w_t * ln_weight.astype(jnp.float32)[:, None]               # gamma folded in
    b_f = (ln_bias.astype(jnp.float32) @ w_t
           + proj_bias.astype(jnp.float32)).reshape(1, OUT_DIM)      # beta folded in
    if use_bf16_matmul:
        w_f = w_f.astype(jnp.bfloat16)

    # ---- Tile sizing: keep blocks (8,128)-aligned, cap for tiny inputs, no host pad ----
    row_tile = max(8, min(row_tile, _round_up(tokens, 8)))
    n_tiles = pl.cdiv(tokens, row_tile)             # last block may be partial
    out_dtype = out_dtype if out_dtype is not None else x.dtype

    out2 = pl.pallas_call(
        feature_projection_kernel,
        out_shape=jax.ShapeDtypeStruct((tokens, OUT_DIM), out_dtype),
        grid_spec=pltpu.PrefetchScalarGridSpec(
            num_scalar_prefetch=0,
            grid=(n_tiles,),
            in_specs=[
                pl.BlockSpec((row_tile, IN_DIM), lambda i: (i, 0)),   # x tile
                pl.BlockSpec((IN_DIM, OUT_DIM), lambda i: (0, 0)),    # W' (VMEM-resident)
                pl.BlockSpec((1, OUT_DIM), lambda i: (0, 0)),         # b' (VMEM-resident)
            ],
            out_specs=pl.BlockSpec((row_tile, OUT_DIM), lambda i: (i, 0)),
        ),
        compiler_params=pltpu.CompilerParams(
            dimension_semantics=("parallel",),      # shard tiles across TCs on v7x
        ),
    )(x2, w_f, b_f)

    return out2.reshape(B, S, OUT_DIM)


def _reference(x, ln_weight, ln_bias, proj_weight, proj_bias):
    """Pure-JAX reference matching the PyTorch module (eval mode)."""
    mu = jnp.mean(x, axis=-1, keepdims=True)
    var = jnp.mean((x - mu) ** 2, axis=-1, keepdims=True)
    xn = (x - mu) * jax.lax.rsqrt(var + EPS) * ln_weight + ln_bias
    return xn @ proj_weight.T + proj_bias


if __name__ == "__main__":
    key = jax.random.PRNGKey(0)
    kx, kg, kbeta, kw, kb, kx2 = jax.random.split(key, 6)

    ln_weight = 1.0 + 0.1 * jax.random.normal(kg, (IN_DIM,), jnp.float32)
    ln_bias = 0.1 * jax.random.normal(kbeta, (IN_DIM,), jnp.float32)
    proj_weight = 0.02 * jax.random.normal(kw, (OUT_DIM, IN_DIM), jnp.float32)
    proj_bias = 0.02 * jax.random.normal(kb, (OUT_DIM,), jnp.float32)

    # --- Small canonical case: B=2, S=8 (single tile) ---
    B, S = 2, 8
    x = jax.random.normal(kx, (B, S, IN_DIM), jnp.float32)
    out = feature_projection(x, ln_weight, ln_bias, proj_weight, proj_bias)
    out = jax.block_until_ready(out)
    ref = _reference(x, ln_weight, ln_bias, proj_weight, proj_bias)
    assert out.shape == (B, S, OUT_DIM)
    assert bool(jnp.all(jnp.isfinite(out)))
    assert bool(jnp.allclose(out, ref, atol=1e-4, rtol=1e-4))

    # --- Non-divisible token count: 2*328 = 656 tokens = 512 + 144 (partial last block,
    #     no host pad / slice) ---
    B2, S2 = 2, 328
    x2 = jax.random.normal(kx2, (B2, S2, IN_DIM), jnp.float32)
    out2 = feature_projection(x2, ln_weight, ln_bias, proj_weight, proj_bias, row_tile=512)
    out2 = jax.block_until_ready(out2)
    ref2 = _reference(x2, ln_weight, ln_bias, proj_weight, proj_bias)
    assert out2.shape == (B2, S2, OUT_DIM)
    assert bool(jnp.allclose(out2, ref2, atol=1e-4, rtol=1e-4))

    # --- bf16 MXU-operand path (f32 accumulation): looser tolerance ---
    out3 = feature_projection(x2, ln_weight, ln_bias, proj_weight, proj_bias,
                              row_tile=512, use_bf16_matmul=True)
    out3 = jax.block_until_ready(out3)
    assert bool(jnp.allclose(out3, ref2, atol=3e-2, rtol=3e-2))

    print("KERNEL_OK")
</pallas_src>

<mosaic_0001>
module attributes {stable_mosaic.version = 11 : i64} {
  func.func @feature_projection_kernel(%arg0: i32, %arg1: memref<16x512xf32, #tpu.memory_space<vmem>>, %arg2: memref<512x768xf32, #tpu.memory_space<vmem>>, %arg3: memref<1x768xf32, #tpu.memory_space<vmem>>, %arg4: memref<16x768xf32, #tpu.memory_space<vmem>>) attributes {dimension_semantics = [#tpu.dimension_semantics<parallel>], iteration_bounds = array<i64: 1>, scalar_prefetch = 0 : i64, scratch_operands = 0 : i64, tpu.core_type = #tpu.core_type<tc>, window_params = [{transform_indices = @transform_0, window_bounds = array<i64: 16, 512>}, {pipeline_mode = #tpu.pipeline_mode<synchronous>, transform_indices = @transform_1, window_bounds = array<i64: 512, 768>}, {pipeline_mode = #tpu.pipeline_mode<synchronous>, transform_indices = @transform_2, window_bounds = array<i64: 1, 768>}, {transform_indices = @transform_3, window_bounds = array<i64: 16, 768>}]} {
    %c0 = arith.constant 0 : index
    %c0_0 = arith.constant 0 : index
    %0 = vector.load %arg1[%c0, %c0_0] : memref<16x512xf32, #tpu.memory_space<vmem>>, vector<16x512xf32>
    %cst = arith.constant dense<0.000000e+00> : vector<16xf32>
    %1 = vector.multi_reduction <add>, %0, %cst [1] : vector<16x512xf32> to vector<16xf32>
    %2 = vector.shape_cast %1 : vector<16xf32> to vector<16x1xf32>
    %cst_1 = arith.constant 5.120000e+02 : f32
    %3 = vector.broadcast %cst_1 : f32 to vector<16x1xf32>
    %4 = arith.divf %2, %3 : vector<16x1xf32>
    %5 = vector.broadcast %4 : vector<16x1xf32> to vector<16x512xf32>
    %6 = arith.subf %0, %5 : vector<16x512xf32>
    %7 = arith.mulf %6, %6 : vector<16x512xf32>
    %cst_2 = arith.constant dense<0.000000e+00> : vector<16xf32>
    %8 = vector.multi_reduction <add>, %7, %cst_2 [1] : vector<16x512xf32> to vector<16xf32>
    %9 = vector.shape_cast %8 : vector<16xf32> to vector<16x1xf32>
    %cst_3 = arith.constant 5.120000e+02 : f32
    %10 = vector.broadcast %cst_3 : f32 to vector<16x1xf32>
    %11 = arith.divf %9, %10 : vector<16x1xf32>
    %cst_4 = arith.constant 9.99999974E-6 : f32
    %12 = vector.broadcast %cst_4 : f32 to vector<16x1xf32>
    %13 = arith.addf %11, %12 : vector<16x1xf32>
    %14 = math.rsqrt %13 : vector<16x1xf32>
    %15 = vector.broadcast %14 : vector<16x1xf32> to vector<16x512xf32>
    %16 = arith.mulf %6, %15 : vector<16x512xf32>
    %c0_5 = arith.constant 0 : index
    %c0_6 = arith.constant 0 : index
    %17 = vector.load %arg2[%c0_5, %c0_6] : memref<512x768xf32, #tpu.memory_space<vmem>>, vector<512x768xf32>
    %cst_7 = arith.constant dense<0.000000e+00> : vector<16x768xf32>
    %18 = tpu.matmul %16, %17, %cst_7 {dimension_numbers = #tpu.dot_dimension_numbers<[1], [0], [0], [1], [0, 0, 1, 1], [], []>} : vector<16x512xf32>, vector<512x768xf32>, vector<16x768xf32> -> vector<16x768xf32>
    %c0_8 = arith.constant 0 : index
    %c0_9 = arith.constant 0 : index
    %19 = vector.load %arg3[%c0_8, %c0_9] : memref<1x768xf32, #tpu.memory_space<vmem>>, vector<1x768xf32>
    %20 = vector.broadcast %19 : vector<1x768xf32> to vector<16x768xf32>
    %21 = arith.addf %18, %20 : vector<16x768xf32>
    %c0_10 = arith.constant 0 : index
    %c0_11 = arith.constant 0 : index
    %22 = vector.load %arg4[%c0_10, %c0_11] : memref<16x768xf32, #tpu.memory_space<vmem>>, vector<16x768xf32>
    tpu.vector_store %arg4[%c0_10, %c0_11], %21 {strides = array<i32>} : memref<16x768xf32, #tpu.memory_space<vmem>>, vector<16x768xf32>,
    return
  }
  func.func @transform_0(%arg0: i32) -> (i32, i32) {
    %c0_i32 = arith.constant 0 : i32
    %c0_i32_0 = arith.constant 0 : i32
    return %arg0, %c0_i32 : i32, i32
  }
  func.func @transform_1(%arg0: i32) -> (i32, i32) {
    %c0_i32 = arith.constant 0 : i32
    %c0_i32_0 = arith.constant 0 : i32
    %c0_i32_1 = arith.constant 0 : i32
    return %c0_i32, %c0_i32_0 : i32, i32
  }
  func.func @transform_2(%arg0: i32) -> (i32, i32) {
    %c0_i32 = arith.constant 0 : i32
    %c0_i32_0 = arith.constant 0 : i32
    %c0_i32_1 = arith.constant 0 : i32
    return %c0_i32, %c0_i32_0 : i32, i32
  }
  func.func @transform_3(%arg0: i32) -> (i32, i32) {
    %c0_i32 = arith.constant 0 : i32
    %c0_i32_0 = arith.constant 0 : i32
    return %arg0, %c0_i32 : i32, i32
  }
}

</mosaic_0001>

<bundles_post_ra>
// kernel: tpu_custom_call.1
= control target key start
LH: loop header
LB: loop body
LE: loop exit
PB: predicated region body
PF: predicated region fallthrough
CT: control target
= control target key end

     0   :  { %8 = vsyncpa [#allocation3], 0  ;;  %s1445_s0 = inlined_call_operand.hbm [shape: f32[16,512], index: 0, kind: input, shape index: {}]   ;;  %s1446_s1 = inlined_call_operand.hbm [shape: f32[512,768], index: 1, kind: input, shape index: {}]   ;;  %s1447_s2 = inlined_call_operand.hbm [shape: f32[1,768], index: 2, kind: input, shape index: {}]   ;;  %s1448_s3 = inlined_call_operand.hbm [shape: f32[16,768], index: 3, kind: output, shape index: {}]  }
   0x1   :  { %9 = vsyncpa [#allocation6], 0  ;;  %s28_s14 = sshll.u32 %s1446_s1, 4  ;;  %s29_s14 = int_to_ptr.hbm [resolvable:$true] %s28_s14 }
   0x2   :  { %10 = vsyncpa [#allocation4], 0  ;;  %s1244_s15 = smov [#allocation5]   ;;  %s15_s19 = sshll.u32 %s1445_s0, 4  ;;  %s16_s19 = int_to_ptr.hbm [resolvable:$true] %s15_s19 }
   0x3   :  { %s30_s16 = sshll.u32 %s1244_s15, 4  ;;  %s1245_s20 = smov 768   ;;  %s31_s16 = int_to_ptr.vmem [resolvable:$true] %s30_s16 }
   0x4   :  { %s1246_s21 = smov 48   ;;  %s1247_s22 = smov [#allocation2]  }
   0x5   :  { %36 = dma.hbm_to_vmem [thread:$0]  %s29_s14, 49152, %s31_s16, [#allocation6], %s1245_s20, %s1245_s20, %s1246_s21  }
   0x6   :  { %s17_s23 = sshll.u32 %s1247_s22, 4  ;;  %s1248_s1 = smov 512   ;;  %s18_s23 = int_to_ptr.vmem [resolvable:$true] %s17_s23 }
   0x7   :  { %s1249_s24 = smov 32   ;;  %s42_s27 = sshll.u32 %s1447_s2, 4  ;;  %s43_s27 = int_to_ptr.hbm [resolvable:$true] %s42_s27 }
   0x8   :  { %23 = dma.hbm_to_vmem [thread:$0]  %s16_s19, 1024, %s18_s23, [#allocation3], %s1248_s1, %s1248_s1, %s1249_s24  }
   0x9   :  { %s1250_s28 = smov [#allocation7]  }
   0xa   :  { %s44_s0 = sshll.u32 %s1250_s28, 4  ;;  %s45_s0 = int_to_ptr.vmem [resolvable:$true] %s44_s0 }
   0xb   :  { %47 = dma.hbm_to_vmem [thread:$0]  %s43_s27, 96, %s45_s0, [#allocation6]  }
   0xc   :  { %1238 = dma.done.wait [#allocation3], 1024  }
   0xd   :  { %1239 = vsyncadd [#allocation3], 4294966272 }
   0xe   :  { %1240 = dma.done.wait [#allocation6], 49248  }
   0xf   :  { %1241 = vsyncadd [#allocation6], 4294918048  ;;  %v1285_v0 = vld [vmem:[#allocation2] sm:$0xff]  ;;  %v1287_v1 = vld [vmem:[#allocation2 + $0x8] sm:$0xff]  ;;  %v1251_v14 = vmov 512.0   ;;  %s1252_s2 = smov [#allocation8]  }
  0x10   :  { %v1289_v2 = vld [vmem:[#allocation2 + $0x10] sm:$0xff]  ;;  %v68_v3 = vadd.f32 %v1287_v1, %v1285_v0  ;;  %v1293_v4 = vld [vmem:[#allocation2 + $0x20] sm:$0xff]  ;;  %v1295_v5 = vld [vmem:[#allocation2 + $0x28] sm:$0xff]  ;;  %1136 = vrcp.f32 %v1251_v14  ;;  %s1111_s29 = sshll.u32 %s1252_s2, 4  ;;  %s1113_s5 = sshll.u32 %s1448_s3, 4  ;;  %s1112_s29 = int_to_ptr.vmem [resolvable:$true] %s1111_s29  ;;  %s1114_s5 = int_to_ptr.hbm [resolvable:$true] %s1113_s5 }
  0x11   :  { %v1297_v6 = vld [vmem:[#allocation2 + $0x18] sm:$0xff]  ;;  %v73_v8 = vadd.f32 %v1295_v5, %v1293_v4  ;;  %v1302_v9 = vld [vmem:[#allocation2 + $0x30] sm:$0xff]  ;;  %v229_v23 = vld [vmem:[#allocation5 + $0x2a0] sm:$0xff] }
  0x12   :  { %v69_v7 = vadd.f32 %v68_v3, %v1289_v2  ;;  %v1306_v12 = vld [vmem:[#allocation2 + $0x38] sm:$0xff]  ;;  %v235_v18 = vld [vmem:[#allocation5 + $0x2d0] sm:$0xff]  ;;  %v325_v24 = vld [vmem:[#allocation5 + $0x5a0] sm:$0xff] }
  0x13   :  { %v74_v11 = vadd.f32 %v73_v8, %v1302_v9  ;;  %v331_v19 = vld [vmem:[#allocation5 + $0x5d0] sm:$0xff]  ;;  %543 = vmatpush.msra.mxu0 %v235_v18  ;;  %v421_v25 = vld [vmem:[#allocation5 + $0x8a0] sm:$0xff] }
  0x14   :  { %v70_v10 = vadd.f32 %v69_v7, %v1297_v6  ;;  %v427_v20 = vld [vmem:[#allocation5 + $0x8d0] sm:$0xff]  ;;  %566 = vmatpush.msra.mxu1 %v331_v19  ;;  %v517_v26 = vld [vmem:[#allocation5 + $0xba0] sm:$0xff] }
  0x15   :  { %v75_v13 = vadd.f32 %v74_v11, %v1306_v12  ;;  %v523_v22 = vld [vmem:[#allocation5 + $0xbd0] sm:$0xff]  ;;  %589 = vmatpush.msra.mxu2 %v427_v20  ;;  %544 = vmatpush.msra.mxu0 %v229_v23  ;;  %v217_v31 = vld [vmem:[#allocation5 + $0x240] sm:$0xff] }
  0x16   :  { %71 = vadd.xlane.f32.xlu0 %v70_v10  ;;  %v1137_v15 = vpop.eup %1136  ;;  %612 = vmatpush.msra.mxu3 %v523_v22  ;;  %v223_v27 = vld [vmem:[#allocation5 + $0x270] sm:$0xff]  ;;  %v313_v32 = vld [vmem:[#allocation5 + $0x540] sm:$0xff] }
  0x17   :  { %v79_v16 = vmul.f32 512.0, %v1137_v15  ;;  %567 = vmatpush.msra.mxu1 %v325_v24  ;;  %v319_v28 = vld [vmem:[#allocation5 + $0x570] sm:$0xff]  ;;  %590 = vmatpush.msra.mxu2 %v421_v25  ;;  %v409_v34 = vld [vmem:[#allocation5 + $0x840] sm:$0xff]  ;;  %vm83_vm0 = vweird.f32 %v1137_v15 }
  0x18   :  { %v415_v29 = vld [vmem:[#allocation5 + $0x870] sm:$0xff]  ;;  %613 = vmatpush.msra.mxu3 %v517_v26  ;;  %545 = vmatpush.msra.mxu0 %v223_v27  ;;  %v505_v35 = vld [vmem:[#allocation5 + $0xb40] sm:$0xff] }
  0x19   :  { %v80_v17 = vsub.f32 1.0, %v79_v16  ;;  %v511_v30 = vld [vmem:[#allocation5 + $0xb70] sm:$0xff]  ;;  %568 = vmatpush.msra.mxu1 %v319_v28  ;;  %591 = vmatpush.msra.mxu2 %v415_v29  ;;  %v205_v40 = vld [vmem:[#allocation5 + $0x1e0] sm:$0xff] }
  0x1a   :  { %614 = vmatpush.msra.mxu3 %v511_v30  ;;  %v211_v36 = vld [vmem:[#allocation5 + $0x210] sm:$0xff]  ;;  %546 = vmatpush.msra.mxu0 %v217_v31  ;;  %v301_v41 = vld [vmem:[#allocation5 + $0x4e0] sm:$0xff] }
  0x1b   :  { %v81_v21 = vmul.f32 %v1137_v15, %v80_v17  ;;  %v307_v37 = vld [vmem:[#allocation5 + $0x510] sm:$0xff]  ;;  %569 = vmatpush.msra.mxu1 %v313_v32  ;;  %592 = vmatpush.msra.mxu2 %v409_v34  ;;  %v397_v43 = vld [vmem:[#allocation5 + $0x7e0] sm:$0xff] }
  0x1c   :  { %v403_v38 = vld [vmem:[#allocation5 + $0x810] sm:$0xff]  ;;  %615 = vmatpush.msra.mxu3 %v505_v35  ;;  %547 = vmatpush.msra.mxu0 %v211_v36  ;;  %v493_v44 = vld [vmem:[#allocation5 + $0xae0] sm:$0xff] }
  0x1d   :  { %v82_v33 = vadd.f32 %v1137_v15, %v81_v21  ;;  %v499_v39 = vld [vmem:[#allocation5 + $0xb10] sm:$0xff]  ;;  %570 = vmatpush.msra.mxu1 %v307_v37  ;;  %593 = vmatpush.msra.mxu2 %v403_v38  ;;  %v193_v51 = vld [vmem:[#allocation5 + $0x180] sm:$0xff] }
  0x1e   :  { %76 = vadd.xlane.f32.xlu0 %v75_v13  ;;  %616 = vmatpush.msra.mxu3 %v499_v39  ;;  %v199_v45 = vld [vmem:[#allocation5 + $0x1b0] sm:$0xff]  ;;  %v289_v52 = vld [vmem:[#allocation5 + $0x480] sm:$0xff] }
  0x1f   :  { %v1309_v42 = vsel %vm83_vm0, %v1137_v15, %v82_v33  ;;  %v295_v46 = vld [vmem:[#allocation5 + $0x4b0] sm:$0xff]  ;;  %548 = vmatpush.msra.mxu0 %v205_v40  ;;  %571 = vmatpush.msra.mxu1 %v301_v41  ;;  %v385_v56 = vld [vmem:[#allocation5 + $0x780] sm:$0xff] }
  0x20   :  { %v391_v48 = vld [vmem:[#allocation5 + $0x7b0] sm:$0xff]  ;;  %594 = vmatpush.msra.mxu2 %v397_v43  ;;  %617 = vmatpush.msra.mxu3 %v493_v44  ;;  %v481_v57 = vld [vmem:[#allocation5 + $0xa80] sm:$0xff] }
  0x21   :  { %v487_v50 = vld [vmem:[#allocation5 + $0xab0] sm:$0xff]  ;;  %549 = vmatpush.msra.mxu0 %v199_v45  ;;  %572 = vmatpush.msra.mxu1 %v295_v46  ;;  %v469_v8 = vld [vmem:[#allocation5 + $0xa20] sm:$0xff] }
  0x22   :  { %595 = vmatpush.msra.mxu2 %v391_v48  ;;  %618 = vmatpush.msra.mxu3 %v487_v50  ;;  %v187_v58 = vld [vmem:[#allocation5 + $0x150] sm:$0xff]  ;;  %v169_v23 = vld [vmem:[#allocation5 + $0xc0] sm:$0xff]  ;;  %v236_v48 = vld [vmem:[#allocation5 + $0x2d8] sm:$0xff] }
  0x23   :  { %550 = vmatpush.msra.mxu0 %v193_v51  ;;  %v283_v59 = vld [vmem:[#allocation5 + $0x450] sm:$0xff]  ;;  %573 = vmatpush.msra.mxu1 %v289_v52  ;;  %v265_v24 = vld [vmem:[#allocation5 + $0x3c0] sm:$0xff]  ;;  %v428_v50 = vld [vmem:[#allocation5 + $0x8d8] sm:$0xff] }
  0x24   :  { %v379_v63 = vld [vmem:[#allocation5 + $0x750] sm:$0xff]  ;;  %596 = vmatpush.msra.mxu2 %v385_v56  ;;  %619 = vmatpush.msra.mxu3 %v481_v57  ;;  %v361_v26 = vld [vmem:[#allocation5 + $0x6c0] sm:$0xff]  ;;  %v524_v51 = vld [vmem:[#allocation5 + $0xbd8] sm:$0xff] }
  0x25   :  { %551 = vmatpush.msra.mxu0 %v187_v58  ;;  %574 = vmatpush.msra.mxu1 %v283_v59  ;;  %v175_v11 = vld [vmem:[#allocation5 + $0xf0] sm:$0xff]  ;;  %v457_v27 = vld [vmem:[#allocation5 + $0x9c0] sm:$0xff]  ;;  %v230_v52 = vld [vmem:[#allocation5 + $0x2a8] sm:$0xff] }
  0x26   :  { %597 = vmatpush.msra.mxu2 %v379_v63  ;;  %v271_v16 = vld [vmem:[#allocation5 + $0x3f0] sm:$0xff]  ;;  %v157_v33 = vld [vmem:[#allocation5 + $0x60] sm:$0xff]  ;;  %v326_v56 = vld [vmem:[#allocation5 + $0x5a8] sm:$0xff] }
  0x27   :  { %v367_v17 = vld [vmem:[#allocation5 + $0x6f0] sm:$0xff]  ;;  %v253_v34 = vld [vmem:[#allocation5 + $0x360] sm:$0xff]  ;;  %v422_v57 = vld [vmem:[#allocation5 + $0x8a8] sm:$0xff] }
  0x28   :  { %v463_v18 = vld [vmem:[#allocation5 + $0x9f0] sm:$0xff]  ;;  %v349_v35 = vld [vmem:[#allocation5 + $0x660] sm:$0xff]  ;;  %v518_v58 = vld [vmem:[#allocation5 + $0xba8] sm:$0xff] }
  0x29   :  { %v163_v28 = vld [vmem:[#allocation5 + $0x90] sm:$0xff]  ;;  %v445_v36 = vld [vmem:[#allocation5 + $0x960] sm:$0xff]  ;;  %v224_v59 = vld [vmem:[#allocation5 + $0x278] sm:$0xff] }
  0x2a   :  { %v259_v29 = vld [vmem:[#allocation5 + $0x390] sm:$0xff]  ;;  %v145_v44 = vld [vmem:[#allocation5] sm:$0xff]  ;;  %v512_v63 = vld [vmem:[#allocation5 + $0xb78] sm:$0xff] }
  0x2b   :  { %v451_v30 = vld [vmem:[#allocation5 + $0x990] sm:$0xff]  ;;  %v241_v45 = vld [vmem:[#allocation5 + $0x300] sm:$0xff] }
  0x2c   :  { %v151_v38 = vld [vmem:[#allocation5 + $0x30] sm:$0xff]  ;;  %v337_v46 = vld [vmem:[#allocation5 + $0x600] sm:$0xff] }
  0x2d   :  { %v247_v39 = vld [vmem:[#allocation5 + $0x330] sm:$0xff] }
  0x2e   :  { %v343_v40 = vld [vmem:[#allocation5 + $0x630] sm:$0xff] }
  0x2f   :  { %v439_v43 = vld [vmem:[#allocation5 + $0x930] sm:$0xff] }
  0x89   :  { %v72_v47 = vpop.xlane.xlu0 %71 }
  0x8a   :  { %v85_v49 = vmul.f32 %v1309_v42, %v72_v47  ;;  %v433_v47 = vld [vmem:[#allocation5 + $0x900] sm:$0xff] }
  0x8c   :  { %v1313_v53 = vsub.f32 %v1285_v0, %v85_v49  ;;  %v1316_v54 = vsub.f32 %v1287_v1, %v85_v49  ;;  %v1319_v55 = vsub.f32 %v1289_v2, %v85_v49  ;;  %v1322_v60 = vsub.f32 %v1297_v6, %v85_v49  ;;  %v475_v0 = vld [vmem:[#allocation5 + $0xa50] sm:$0xff]  ;;  %v181_v1 = vld [vmem:[#allocation5 + $0x120] sm:$0xff]  ;;  %v332_v49 = vld [vmem:[#allocation5 + $0x5d8] sm:$0xff] }
  0x8d   :  { %v277_v2 = vld [vmem:[#allocation5 + $0x420] sm:$0xff]  ;;  %620 = vmatpush.msra.mxu3 %v475_v0  ;;  %552 = vmatpush.msra.mxu0 %v181_v1  ;;  %v218_v0 = vld [vmem:[#allocation5 + $0x248] sm:$0xff] }
  0x8e   :  { %v95_v61 = vmul.f32 %v1313_v53, %v1313_v53  ;;  %v96_v62 = vmul.f32 %v1316_v54, %v1316_v54  ;;  %v97_v3 = vmul.f32 %v1319_v55, %v1319_v55  ;;  %v373_v6 = vld [vmem:[#allocation5 + $0x720] sm:$0xff]  ;;  %v98_v14 = vmul.f32 %v1322_v60, %v1322_v60  ;;  %575 = vmatpush.msra.mxu1 %v277_v2  ;;  %v314_v1 = vld [vmem:[#allocation5 + $0x548] sm:$0xff] }
  0x8f   :  { %598 = vmatpush.msra.mxu2 %v373_v6  ;;  %621 = vmatpush.msra.mxu3 %v469_v8  ;;  %v410_v2 = vld [vmem:[#allocation5 + $0x848] sm:$0xff]  ;;  %v308_v6 = vld [vmem:[#allocation5 + $0x518] sm:$0xff] }
  0x90   :  { %v103_v7 = vadd.f32 %v96_v62, %v95_v61  ;;  %553 = vmatpush.msra.mxu0 %v175_v11  ;;  %576 = vmatpush.msra.mxu1 %v271_v16  ;;  %v320_v61 = vld [vmem:[#allocation5 + $0x578] sm:$0xff]  ;;  %v206_v11 = vld [vmem:[#allocation5 + $0x1e8] sm:$0xff] }
  0x91   :  { %v77_v10 = vpop.xlane.xlu0 %76  ;;  %599 = vmatpush.msra.mxu2 %v367_v17  ;;  %622 = vmatpush.msra.mxu3 %v463_v18  ;;  %v416_v62 = vld [vmem:[#allocation5 + $0x878] sm:$0xff] }
  0x92   :  { %v86_v13 = vmul.f32 %v1309_v42, %v77_v10  ;;  %v104_v15 = vadd.f32 %v103_v7, %v97_v3  ;;  %554 = vmatpush.msra.mxu0 %v169_v23  ;;  %577 = vmatpush.msra.mxu1 %v265_v24  ;;  %v506_v3 = vld [vmem:[#allocation5 + $0xb48] sm:$0xff]  ;;  %v212_v7 = vld [vmem:[#allocation5 + $0x218] sm:$0xff] }
  0x93   :  { %600 = vmatpush.msra.mxu2 %v361_v26  ;;  %623 = vmatpush.msra.mxu3 %v457_v27  ;;  %v404_v8 = vld [vmem:[#allocation5 + $0x818] sm:$0xff]  ;;  %v194_v23 = vld [vmem:[#allocation5 + $0x188] sm:$0xff] }
  0x94   :  { %v1334_v19 = vsub.f32 %v1293_v4, %v86_v13  ;;  %v1337_v20 = vsub.f32 %v1295_v5, %v86_v13  ;;  %v105_v21 = vadd.f32 %v104_v15, %v98_v14  ;;  %v1340_v22 = vsub.f32 %v1302_v9, %v86_v13  ;;  %555 = vmatpush.msra.mxu0 %v163_v28  ;;  %v500_v10 = vld [vmem:[#allocation5 + $0xb18] sm:$0xff]  ;;  %v398_v14 = vld [vmem:[#allocation5 + $0x7e8] sm:$0xff] }
  0x95   :  { %v1343_v25 = vsub.f32 %v1306_v12, %v86_v13  ;;  %v355_v12 = vld [vmem:[#allocation5 + $0x690] sm:$0xff]  ;;  %578 = vmatpush.msra.mxu1 %v259_v29  ;;  %624 = vmatpush.msra.mxu3 %v451_v30  ;;  %v302_v13 = vld [vmem:[#allocation5 + $0x4e8] sm:$0xff]  ;;  %v200_v16 = vld [vmem:[#allocation5 + $0x1b8] sm:$0xff] }
  0x96   :  { %106 = vadd.xlane.f32.xlu1 %v105_v21  ;;  %v99_v4 = vmul.f32 %v1334_v19, %v1334_v19  ;;  %v100_v5 = vmul.f32 %v1337_v20, %v1337_v20  ;;  %v101_v9 = vmul.f32 %v1340_v22, %v1340_v22  ;;  %601 = vmatpush.msra.mxu2 %v355_v12  ;;  %v494_v15 = vld [vmem:[#allocation5 + $0xae8] sm:$0xff]  ;;  %v296_v17 = vld [vmem:[#allocation5 + $0x4b8] sm:$0xff] }
  0x97   :  { %v102_v31 = vmul.f32 %v1343_v25, %v1343_v25  ;;  %556 = vmatpush.msra.mxu0 %v157_v33  ;;  %579 = vmatpush.msra.mxu1 %v253_v34  ;;  %v392_v18 = vld [vmem:[#allocation5 + $0x7b8] sm:$0xff]  ;;  %v290_v24 = vld [vmem:[#allocation5 + $0x488] sm:$0xff] }
  0x98   :  { %v108_v32 = vadd.f32 %v100_v5, %v99_v4  ;;  %602 = vmatpush.msra.mxu2 %v349_v35  ;;  %625 = vmatpush.msra.mxu3 %v445_v36  ;;  %v488_v21 = vld [vmem:[#allocation5 + $0xab8] sm:$0xff]  ;;  %v386_v26 = vld [vmem:[#allocation5 + $0x788] sm:$0xff] }
  0x99   :  { %557 = vmatpush.msra.mxu0 %v151_v38  ;;  %580 = vmatpush.msra.mxu1 %v247_v39  ;;  %v482_v27 = vld [vmem:[#allocation5 + $0xa88] sm:$0xff]  ;;  %v188_v4 = vld [vmem:[#allocation5 + $0x158] sm:$0xff] }
  0x9a   :  { %v109_v37 = vadd.f32 %v108_v32, %v101_v9  ;;  %603 = vmatpush.msra.mxu2 %v343_v40  ;;  %626 = vmatpush.msra.mxu3 %v439_v43  ;;  %v284_v5 = vld [vmem:[#allocation5 + $0x458] sm:$0xff]  ;;  %v182_v29 = vld [vmem:[#allocation5 + $0x128] sm:$0xff] }
  0x9b   :  { %558 = vmatpush.msra.mxu0 %v145_v44  ;;  %581 = vmatpush.msra.mxu1 %v241_v45  ;;  %v380_v9 = vld [vmem:[#allocation5 + $0x758] sm:$0xff]  ;;  %v278_v12 = vld [vmem:[#allocation5 + $0x428] sm:$0xff] }
  0x9c   :  { %v110_v41 = vadd.f32 %v109_v37, %v102_v31  ;;  %604 = vmatpush.msra.mxu2 %v337_v46  ;;  %627 = vmatpush.msra.mxu3 %v433_v47  ;;  %v476_v28 = vld [vmem:[#allocation5 + $0xa58] sm:$0xff]  ;;  %v374_v30 = vld [vmem:[#allocation5 + $0x728] sm:$0xff] }
  0x9d   :  { %635 = vmatpush.msrb.mxu0 %v236_v48  ;;  %658 = vmatpush.msrb.mxu1 %v332_v49  ;;  %v470_v31 = vld [vmem:[#allocation5 + $0xa28] sm:$0xff]  ;;  %v176_v32 = vld [vmem:[#allocation5 + $0xf8] sm:$0xff] }
  0x9e   :  { %111 = vadd.xlane.f32.xlu1 %v110_v41  ;;  %681 = vmatpush.msrb.mxu2 %v428_v50  ;;  %v272_v33 = vld [vmem:[#allocation5 + $0x3f8] sm:$0xff]  ;;  %v170_v36 = vld [vmem:[#allocation5 + $0xc8] sm:$0xff] }
  0x9f   :  { %704 = vmatpush.msrb.mxu3 %v524_v51  ;;  %636 = vmatpush.msrb.mxu0 %v230_v52  ;;  %v368_v34 = vld [vmem:[#allocation5 + $0x6f8] sm:$0xff]  ;;  %v266_v37 = vld [vmem:[#allocation5 + $0x3c8] sm:$0xff] }
  0xa0   :  { %659 = vmatpush.msrb.mxu1 %v326_v56  ;;  %682 = vmatpush.msrb.mxu2 %v422_v57  ;;  %v464_v35 = vld [vmem:[#allocation5 + $0x9f8] sm:$0xff]  ;;  %v362_v38 = vld [vmem:[#allocation5 + $0x6c8] sm:$0xff] }
  0xa1   :  { %705 = vmatpush.msrb.mxu3 %v518_v58  ;;  %637 = vmatpush.msrb.mxu0 %v224_v59  ;;  %v458_v39 = vld [vmem:[#allocation5 + $0x9c8] sm:$0xff]  ;;  %v164_v40 = vld [vmem:[#allocation5 + $0x98] sm:$0xff] }
  0xa2   :  { %660 = vmatpush.msrb.mxu1 %v320_v61  ;;  %683 = vmatpush.msrb.mxu2 %v416_v62  ;;  %v260_v41 = vld [vmem:[#allocation5 + $0x398] sm:$0xff]  ;;  %v158_v45 = vld [vmem:[#allocation5 + $0x68] sm:$0xff] }
  0xa3   :  { %706 = vmatpush.msrb.mxu3 %v512_v63  ;;  %638 = vmatpush.msrb.mxu0 %v218_v0  ;;  %v356_v43 = vld [vmem:[#allocation5 + $0x698] sm:$0xff]  ;;  %v254_v46 = vld [vmem:[#allocation5 + $0x368] sm:$0xff] }
  0xa4   :  { %661 = vmatpush.msrb.mxu1 %v314_v1  ;;  %684 = vmatpush.msrb.mxu2 %v410_v2  ;;  %v452_v44 = vld [vmem:[#allocation5 + $0x998] sm:$0xff]  ;;  %v350_v47 = vld [vmem:[#allocation5 + $0x668] sm:$0xff] }
  0xa5   :  { %707 = vmatpush.msrb.mxu3 %v506_v3  ;;  %639 = vmatpush.msrb.mxu0 %v212_v7  ;;  %v446_v48 = vld [vmem:[#allocation5 + $0x968] sm:$0xff]  ;;  %v152_v49 = vld [vmem:[#allocation5 + $0x38] sm:$0xff] }
  0xa6   :  { %662 = vmatpush.msrb.mxu1 %v308_v6  ;;  %685 = vmatpush.msrb.mxu2 %v404_v8  ;;  %v248_v50 = vld [vmem:[#allocation5 + $0x338] sm:$0xff]  ;;  %v146_v56 = vld [vmem:[#allocation5 + $0x8] sm:$0xff] }
  0xa7   :  { %708 = vmatpush.msrb.mxu3 %v500_v10  ;;  %640 = vmatpush.msrb.mxu0 %v206_v11  ;;  %v344_v51 = vld [vmem:[#allocation5 + $0x638] sm:$0xff]  ;;  %v242_v57 = vld [vmem:[#allocation5 + $0x308] sm:$0xff] }
  0xa8   :  { %663 = vmatpush.msrb.mxu1 %v302_v13  ;;  %686 = vmatpush.msrb.mxu2 %v398_v14  ;;  %v440_v52 = vld [vmem:[#allocation5 + $0x938] sm:$0xff]  ;;  %v338_v58 = vld [vmem:[#allocation5 + $0x608] sm:$0xff] }
  0xa9   :  { %709 = vmatpush.msrb.mxu3 %v494_v15  ;;  %641 = vmatpush.msrb.mxu0 %v200_v16  ;;  %v434_v59 = vld [vmem:[#allocation5 + $0x908] sm:$0xff] }
  0xaa   :  { %664 = vmatpush.msrb.mxu1 %v296_v17  ;;  %687 = vmatpush.msrb.mxu2 %v392_v18 }
  0xab   :  { %710 = vmatpush.msrb.mxu3 %v488_v21  ;;  %642 = vmatpush.msrb.mxu0 %v194_v23 }
  0xac   :  { %665 = vmatpush.msrb.mxu1 %v290_v24  ;;  %688 = vmatpush.msrb.mxu2 %v386_v26  ;;  %v237_v24 = vld [vmem:[#allocation5 + $0x2e0] sm:$0xff] }
  0xad   :  { %711 = vmatpush.msrb.mxu3 %v482_v27  ;;  %643 = vmatpush.msrb.mxu0 %v188_v4  ;;  %v333_v26 = vld [vmem:[#allocation5 + $0x5e0] sm:$0xff] }
  0xae   :  { %666 = vmatpush.msrb.mxu1 %v284_v5  ;;  %689 = vmatpush.msrb.mxu2 %v380_v9  ;;  %v429_v27 = vld [vmem:[#allocation5 + $0x8e0] sm:$0xff]  ;;  %v519_v5 = vld [vmem:[#allocation5 + $0xbb0] sm:$0xff] }
  0xaf   :  { %712 = vmatpush.msrb.mxu3 %v476_v28  ;;  %644 = vmatpush.msrb.mxu0 %v182_v29  ;;  %v525_v4 = vld [vmem:[#allocation5 + $0xbe0] sm:$0xff] }
  0xb0   :  { %667 = vmatpush.msrb.mxu1 %v278_v12  ;;  %690 = vmatpush.msrb.mxu2 %v374_v30  ;;  %v225_v28 = vld [vmem:[#allocation5 + $0x280] sm:$0xff] }
  0xb1   :  { %713 = vmatpush.msrb.mxu3 %v470_v31  ;;  %645 = vmatpush.msrb.mxu0 %v176_v32  ;;  %v321_v29 = vld [vmem:[#allocation5 + $0x580] sm:$0xff]  ;;  %v219_v32 = vld [vmem:[#allocation5 + $0x250] sm:$0xff] }
  0xb2   :  { %668 = vmatpush.msrb.mxu1 %v272_v33  ;;  %691 = vmatpush.msrb.mxu2 %v368_v34  ;;  %v417_v12 = vld [vmem:[#allocation5 + $0x880] sm:$0xff]  ;;  %v315_v34 = vld [vmem:[#allocation5 + $0x550] sm:$0xff] }
  0xb3   :  { %714 = vmatpush.msrb.mxu3 %v464_v35  ;;  %646 = vmatpush.msrb.mxu0 %v170_v36  ;;  %v513_v31 = vld [vmem:[#allocation5 + $0xb80] sm:$0xff]  ;;  %v411_v35 = vld [vmem:[#allocation5 + $0x850] sm:$0xff] }
  0xb4   :  { %669 = vmatpush.msrb.mxu1 %v266_v37  ;;  %692 = vmatpush.msrb.mxu2 %v362_v38  ;;  %v507_v38 = vld [vmem:[#allocation5 + $0xb50] sm:$0xff] }
  0xb5   :  { %715 = vmatpush.msrb.mxu3 %v458_v39  ;;  %647 = vmatpush.msrb.mxu0 %v164_v40  ;;  %v309_v40 = vld [vmem:[#allocation5 + $0x520] sm:$0xff] }
  0xb6   :  { %670 = vmatpush.msrb.mxu1 %v260_v41  ;;  %693 = vmatpush.msrb.mxu2 %v356_v43  ;;  %v207_v41 = vld [vmem:[#allocation5 + $0x1f0] sm:$0xff] }
  0xb7   :  { %716 = vmatpush.msrb.mxu3 %v452_v44  ;;  %648 = vmatpush.msrb.mxu0 %v158_v45  ;;  %v399_v43 = vld [vmem:[#allocation5 + $0x7f0] sm:$0xff]  ;;  %v201_v45 = vld [vmem:[#allocation5 + $0x1c0] sm:$0xff] }
  0xb8   :  { %671 = vmatpush.msrb.mxu1 %v254_v46  ;;  %694 = vmatpush.msrb.mxu2 %v350_v47  ;;  %v495_v44 = vld [vmem:[#allocation5 + $0xaf0] sm:$0xff]  ;;  %v297_v46 = vld [vmem:[#allocation5 + $0x4c0] sm:$0xff] }
  0xb9   :  { %717 = vmatpush.msrb.mxu3 %v446_v48  ;;  %649 = vmatpush.msrb.mxu0 %v152_v49  ;;  %v393_v47 = vld [vmem:[#allocation5 + $0x7c0] sm:$0xff]  ;;  %v195_v49 = vld [vmem:[#allocation5 + $0x190] sm:$0xff] }
  0xba   :  { %672 = vmatpush.msrb.mxu1 %v248_v50  ;;  %695 = vmatpush.msrb.mxu2 %v344_v51  ;;  %v489_v48 = vld [vmem:[#allocation5 + $0xac0] sm:$0xff]  ;;  %v291_v50 = vld [vmem:[#allocation5 + $0x490] sm:$0xff] }
  0xbb   :  { %718 = vmatpush.msrb.mxu3 %v440_v52  ;;  %650 = vmatpush.msrb.mxu0 %v146_v56  ;;  %v387_v51 = vld [vmem:[#allocation5 + $0x790] sm:$0xff]  ;;  %v189_v56 = vld [vmem:[#allocation5 + $0x160] sm:$0xff] }
  0xbc   :  { %673 = vmatpush.msrb.mxu1 %v242_v57  ;;  %696 = vmatpush.msrb.mxu2 %v338_v58  ;;  %v483_v52 = vld [vmem:[#allocation5 + $0xa90] sm:$0xff]  ;;  %v285_v57 = vld [vmem:[#allocation5 + $0x460] sm:$0xff] }
  0xbd   :  { %719 = vmatpush.msrb.mxu3 %v434_v59  ;;  %v381_v58 = vld [vmem:[#allocation5 + $0x760] sm:$0xff] }
  0xbe   :  { %v477_v59 = vld [vmem:[#allocation5 + $0xa60] sm:$0xff] }
 0x109   :  { %v107_v61 = vpop.xlane.xlu1 %106 }
 0x10a   :  { %v113_v62 = vmul.f32 %v107_v61, %v1309_v42  ;;  %v183_v61 = vld [vmem:[#allocation5 + $0x130] sm:$0xff] }
 0x10c   :  { %v115_v63 = vadd.f32 1e-05, %v113_v62  ;;  %v279_v62 = vld [vmem:[#allocation5 + $0x430] sm:$0xff] }
 0x10e   :  { %1138 = vrsqrt.f32 %v115_v63  ;;  %vm123_vm2 = vweird.f32 %v115_v63 }
 0x111   :  { %v112_v0 = vpop.xlane.xlu1 %111 }
 0x112   :  { %v114_v1 = vmul.f32 %v112_v0, %v1309_v42  ;;  %v471_v0 = vld [vmem:[#allocation5 + $0xa30] sm:$0xff] }
 0x114   :  { %v1139_v2 = vpop.eup %1138  ;;  %v116_v3 = vadd.f32 1e-05, %v114_v1  ;;  %v177_v1 = vld [vmem:[#allocation5 + $0x100] sm:$0xff] }
 0x115   :  { %v118_v7 = vmul.f32 %v1139_v2, %v115_v63  ;;  %vm124_vm1 = vweird.f32 %v1139_v2  ;;  %v375_v63 = vld [vmem:[#allocation5 + $0x730] sm:$0xff] }
 0x116   :  { %1140 = vrsqrt.f32 %v116_v3  ;;  %vm125_vm3 = vmor %vm123_vm2, %vm124_vm1  ;;  %vm133_vm4 = vweird.f32 %v116_v3 }
 0x117   :  { %v119_v6 = vmul.f32 %v1139_v2, %v118_v7  ;;  %v465_v7 = vld [vmem:[#allocation5 + $0xa00] sm:$0xff] }
 0x119   :  { %v120_v8 = vmul.f32 0.5, %v119_v6  ;;  %v171_v6 = vld [vmem:[#allocation5 + $0xd0] sm:$0xff] }
 0x11b   :  { %v121_v10 = vsub.f32 1.5, %v120_v8  ;;  %v267_v8 = vld [vmem:[#allocation5 + $0x3d0] sm:$0xff] }
 0x11c   :  { %v1141_v11 = vpop.eup %1140 }
 0x11d   :  { %v122_v13 = vmul.f32 %v1139_v2, %v121_v10  ;;  %v128_v14 = vmul.f32 %v1141_v11, %v116_v3  ;;  %vm134_vm5 = vweird.f32 %v1141_v11  ;;  %v369_v3 = vld [vmem:[#allocation5 + $0x700] sm:$0xff]  ;;  %v363_v10 = vld [vmem:[#allocation5 + $0x6d0] sm:$0xff] }
 0x11e   :  { %vm135_vm6 = vmor %vm133_vm4, %vm134_vm5 }
 0x11f   :  { %v126_v15 = vsel %vm125_vm3, %v1139_v2, %v122_v13  ;;  %v129_v16 = vmul.f32 %v1141_v11, %v128_v14  ;;  %v273_v2 = vld [vmem:[#allocation5 + $0x400] sm:$0xff] }
 0x120   :  { %v1356_v17 = vmul.f32 %v126_v15, %v1313_v53  ;;  %v1359_v42 = vmul.f32 %v126_v15, %v1316_v54  ;;  %v1362_v18 = vmul.f32 %v126_v15, %v1319_v55  ;;  %v1365_v21 = vmul.f32 %v126_v15, %v1322_v60  ;;  %v231_v54 = vld [vmem:[#allocation5 + $0x2b0] sm:$0xff]  ;;  %v165_v13 = vld [vmem:[#allocation5 + $0xa0] sm:$0xff] }
 0x121   :  { %v130_v23 = vmul.f32 0.5, %v129_v16  ;;  %v327_v55 = vld [vmem:[#allocation5 + $0x5b0] sm:$0xff]  ;;  %v261_v14 = vld [vmem:[#allocation5 + $0x3a0] sm:$0xff] }
 0x122   :  { %559 = vmatmul.f32.vlgmr.msra.gmra.mxu0 %v1356_v17  ;;  %582 = vmatmul.f32.vlgmr.msra.gmra.mxu1 %v1359_v42  ;;  %v423_v60 = vld [vmem:[#allocation5 + $0x8b0] sm:$0xff]  ;;  %v357_v15 = vld [vmem:[#allocation5 + $0x6a0] sm:$0xff] }
 0x123   :  { %v131_v53 = vsub.f32 1.5, %v130_v23  ;;  %605 = vmatmul.f32.vlgmr.msra.gmra.mxu2 %v1362_v18  ;;  %628 = vmatmul.f32.vlgmr.msra.gmra.mxu3 %v1365_v21  ;;  %v453_v16 = vld [vmem:[#allocation5 + $0x9a0] sm:$0xff]  ;;  %v159_v23 = vld [vmem:[#allocation5 + $0x70] sm:$0xff] }
 0x124   :  { %727 = vmatpush.msra.mxu0 %v237_v24  ;;  %750 = vmatpush.msra.mxu1 %v333_v26  ;;  %v255_v24 = vld [vmem:[#allocation5 + $0x370] sm:$0xff] }
 0x125   :  { %v132_v9 = vmul.f32 %v1141_v11, %v131_v53  ;;  %773 = vmatpush.msra.mxu2 %v429_v27  ;;  %796 = vmatpush.msra.mxu3 %v525_v4  ;;  %v351_v26 = vld [vmem:[#allocation5 + $0x670] sm:$0xff]  ;;  %v153_v4 = vld [vmem:[#allocation5 + $0x40] sm:$0xff] }
 0x126   :  { %728 = vmatpush.msra.mxu0 %v231_v54  ;;  %751 = vmatpush.msra.mxu1 %v327_v55  ;;  %v447_v27 = vld [vmem:[#allocation5 + $0x970] sm:$0xff]  ;;  %v249_v53 = vld [vmem:[#allocation5 + $0x340] sm:$0xff] }
 0x127   :  { %v136_v30 = vsel %vm135_vm6, %v1141_v11, %v132_v9  ;;  %774 = vmatpush.msra.mxu2 %v423_v60  ;;  %797 = vmatpush.msra.mxu3 %v519_v5  ;;  %v459_v11 = vld [vmem:[#allocation5 + $0x9d0] sm:$0xff]  ;;  %v345_v54 = vld [vmem:[#allocation5 + $0x640] sm:$0xff] }
 0x128   :  { %v1372_v33 = vmul.f32 %v136_v30, %v1334_v19  ;;  %729 = vmatpush.msra.mxu0 %v225_v28  ;;  %v1375_v36 = vmul.f32 %v136_v30, %v1337_v20  ;;  %v1378_v37 = vmul.f32 %v136_v30, %v1340_v22  ;;  %752 = vmatpush.msra.mxu1 %v321_v29  ;;  %v213_v19 = vld [vmem:[#allocation5 + $0x220] sm:$0xff]  ;;  %v147_v60 = vld [vmem:[#allocation5 + $0x10] sm:$0xff]  ;;  %v238_v29 = vld [vmem:[#allocation5 + $0x2e8] sm:$0xff] }
 0x129   :  { %775 = vmatpush.msra.mxu2 %v417_v12  ;;  %v1381_v39 = vmul.f32 %v136_v30, %v1343_v25  ;;  %798 = vmatpush.msra.mxu3 %v513_v31  ;;  %v405_v20 = vld [vmem:[#allocation5 + $0x820] sm:$0xff]  ;;  %v303_v25 = vld [vmem:[#allocation5 + $0x4f0] sm:$0xff]  ;;  %v334_v12 = vld [vmem:[#allocation5 + $0x5e8] sm:$0xff] }
 0x12a   :  { %730 = vmatpush.msra.mxu0 %v219_v32  ;;  %753 = vmatpush.msra.mxu1 %v315_v34  ;;  %v501_v22 = vld [vmem:[#allocation5 + $0xb20] sm:$0xff]  ;;  %v243_v5 = vld [vmem:[#allocation5 + $0x310] sm:$0xff]  ;;  %v430_v30 = vld [vmem:[#allocation5 + $0x8e8] sm:$0xff] }
 0x12b   :  { %776 = vmatpush.msra.mxu2 %v411_v35  ;;  %799 = vmatpush.msra.mxu3 %v507_v38  ;;  %v441_v55 = vld [vmem:[#allocation5 + $0x940] sm:$0xff]  ;;  %v339_v9 = vld [vmem:[#allocation5 + $0x610] sm:$0xff]  ;;  %v526_v31 = vld [vmem:[#allocation5 + $0xbe8] sm:$0xff] }
 0x12c   :  { %562 = vmatmul.f32.gmra.mxu0 %v1372_v33  ;;  %585 = vmatmul.f32.gmra.mxu1 %v1375_v36  ;;  %v435_v28 = vld [vmem:[#allocation5 + $0x910] sm:$0xff]  ;;  %v232_v32 = vld [vmem:[#allocation5 + $0x2b8] sm:$0xff] }
 0x12d   :  { %608 = vmatmul.f32.gmra.mxu2 %v1378_v37  ;;  %631 = vmatmul.f32.gmra.mxu3 %v1381_v39  ;;  %v328_v34 = vld [vmem:[#allocation5 + $0x5b8] sm:$0xff] }
 0x12e   :  { %731 = vmatpush.msra.mxu0 %v213_v19  ;;  %754 = vmatpush.msra.mxu1 %v309_v40  ;;  %v424_v35 = vld [vmem:[#allocation5 + $0x8b8] sm:$0xff]  ;;  %v226_v19 = vld [vmem:[#allocation5 + $0x288] sm:$0xff] }
 0x12f   :  { %777 = vmatpush.msra.mxu2 %v405_v20  ;;  %800 = vmatpush.msra.mxu3 %v501_v22  ;;  %v520_v38 = vld [vmem:[#allocation5 + $0xbb8] sm:$0xff]  ;;  %v322_v40 = vld [vmem:[#allocation5 + $0x588] sm:$0xff] }
 0x130   :  { %732 = vmatpush.msra.mxu0 %v207_v41  ;;  %755 = vmatpush.msra.mxu1 %v303_v25  ;;  %v418_v20 = vld [vmem:[#allocation5 + $0x888] sm:$0xff]  ;;  %v220_v41 = vld [vmem:[#allocation5 + $0x258] sm:$0xff] }
 0x131   :  { %778 = vmatpush.msra.mxu2 %v399_v43  ;;  %801 = vmatpush.msra.mxu3 %v495_v44  ;;  %v514_v22 = vld [vmem:[#allocation5 + $0xb88] sm:$0xff]  ;;  %v316_v25 = vld [vmem:[#allocation5 + $0x558] sm:$0xff] }
 0x132   :  { %733 = vmatpush.msra.mxu0 %v201_v45  ;;  %756 = vmatpush.msra.mxu1 %v297_v46  ;;  %v412_v43 = vld [vmem:[#allocation5 + $0x858] sm:$0xff]  ;;  %v214_v45 = vld [vmem:[#allocation5 + $0x228] sm:$0xff] }
 0x133   :  { %779 = vmatpush.msra.mxu2 %v393_v47  ;;  %802 = vmatpush.msra.mxu3 %v489_v48  ;;  %v508_v44 = vld [vmem:[#allocation5 + $0xb58] sm:$0xff]  ;;  %v310_v46 = vld [vmem:[#allocation5 + $0x528] sm:$0xff] }
 0x134   :  { %734 = vmatpush.msra.mxu0 %v195_v49  ;;  %757 = vmatpush.msra.mxu1 %v291_v50  ;;  %v406_v47 = vld [vmem:[#allocation5 + $0x828] sm:$0xff]  ;;  %v208_v49 = vld [vmem:[#allocation5 + $0x1f8] sm:$0xff] }
 0x135   :  { %780 = vmatpush.msra.mxu2 %v387_v51  ;;  %803 = vmatpush.msra.mxu3 %v483_v52  ;;  %v502_v48 = vld [vmem:[#allocation5 + $0xb28] sm:$0xff]  ;;  %v304_v50 = vld [vmem:[#allocation5 + $0x4f8] sm:$0xff] }
 0x136   :  { %651 = vmatmul.f32.vlgmr.msrb.gmra.mxu0 %v1356_v17  ;;  %674 = vmatmul.f32.vlgmr.msrb.gmra.mxu1 %v1359_v42  ;;  %v400_v51 = vld [vmem:[#allocation5 + $0x7f8] sm:$0xff] }
 0x137   :  { %697 = vmatmul.f32.vlgmr.msrb.gmra.mxu2 %v1362_v18  ;;  %720 = vmatmul.f32.vlgmr.msrb.gmra.mxu3 %v1365_v21  ;;  %v496_v52 = vld [vmem:[#allocation5 + $0xaf8] sm:$0xff] }
 0x138   :  { %735 = vmatpush.msra.mxu0 %v189_v56  ;;  %758 = vmatpush.msra.mxu1 %v285_v57  ;;  %v202_v56 = vld [vmem:[#allocation5 + $0x1c8] sm:$0xff] }
 0x139   :  { %781 = vmatpush.msra.mxu2 %v381_v58  ;;  %804 = vmatpush.msra.mxu3 %v477_v59  ;;  %v298_v57 = vld [vmem:[#allocation5 + $0x4c8] sm:$0xff] }
 0x13a   :  { %736 = vmatpush.msra.mxu0 %v183_v61  ;;  %759 = vmatpush.msra.mxu1 %v279_v62  ;;  %v394_v58 = vld [vmem:[#allocation5 + $0x7c8] sm:$0xff]  ;;  %v196_v61 = vld [vmem:[#allocation5 + $0x198] sm:$0xff] }
 0x13b   :  { %782 = vmatpush.msra.mxu2 %v375_v63  ;;  %805 = vmatpush.msra.mxu3 %v471_v0  ;;  %v490_v59 = vld [vmem:[#allocation5 + $0xac8] sm:$0xff]  ;;  %v292_v62 = vld [vmem:[#allocation5 + $0x498] sm:$0xff] }
 0x13c   :  { %737 = vmatpush.msra.mxu0 %v177_v1  ;;  %760 = vmatpush.msra.mxu1 %v273_v2  ;;  %v388_v63 = vld [vmem:[#allocation5 + $0x798] sm:$0xff]  ;;  %v190_v1 = vld [vmem:[#allocation5 + $0x168] sm:$0xff] }
 0x13d   :  { %783 = vmatpush.msra.mxu2 %v369_v3  ;;  %806 = vmatpush.msra.mxu3 %v465_v7  ;;  %v484_v0 = vld [vmem:[#allocation5 + $0xa98] sm:$0xff]  ;;  %v286_v2 = vld [vmem:[#allocation5 + $0x468] sm:$0xff] }
 0x13e   :  { %738 = vmatpush.msra.mxu0 %v171_v6  ;;  %761 = vmatpush.msra.mxu1 %v267_v8  ;;  %v382_v3 = vld [vmem:[#allocation5 + $0x768] sm:$0xff]  ;;  %v184_v6 = vld [vmem:[#allocation5 + $0x138] sm:$0xff] }
 0x13f   :  { %784 = vmatpush.msra.mxu2 %v363_v10  ;;  %807 = vmatpush.msra.mxu3 %v459_v11  ;;  %v478_v7 = vld [vmem:[#allocation5 + $0xa68] sm:$0xff]  ;;  %v280_v8 = vld [vmem:[#allocation5 + $0x438] sm:$0xff] }
 0x140   :  { %654 = vmatmul.f32.gmra.mxu0 %v1372_v33  ;;  %677 = vmatmul.f32.gmra.mxu1 %v1375_v36  ;;  %v376_v10 = vld [vmem:[#allocation5 + $0x738] sm:$0xff] }
 0x141   :  { %700 = vmatmul.f32.gmra.mxu2 %v1378_v37  ;;  %723 = vmatmul.f32.gmra.mxu3 %v1381_v39  ;;  %v472_v11 = vld [vmem:[#allocation5 + $0xa38] sm:$0xff] }
 0x142   :  { %739 = vmatpush.msra.mxu0 %v165_v13  ;;  %762 = vmatpush.msra.mxu1 %v261_v14  ;;  %v178_v13 = vld [vmem:[#allocation5 + $0x108] sm:$0xff] }
 0x143   :  { %785 = vmatpush.msra.mxu2 %v357_v15  ;;  %808 = vmatpush.msra.mxu3 %v453_v16  ;;  %v274_v14 = vld [vmem:[#allocation5 + $0x408] sm:$0xff] }
 0x144   :  { %740 = vmatpush.msra.mxu0 %v159_v23  ;;  %763 = vmatpush.msra.mxu1 %v255_v24  ;;  %v370_v15 = vld [vmem:[#allocation5 + $0x708] sm:$0xff]  ;;  %v172_v23 = vld [vmem:[#allocation5 + $0xd8] sm:$0xff] }
 0x145   :  { %786 = vmatpush.msra.mxu2 %v351_v26  ;;  %809 = vmatpush.msra.mxu3 %v447_v27  ;;  %v466_v16 = vld [vmem:[#allocation5 + $0xa08] sm:$0xff]  ;;  %v268_v24 = vld [vmem:[#allocation5 + $0x3d8] sm:$0xff] }
 0x146   :  { %741 = vmatpush.msra.mxu0 %v153_v4  ;;  %764 = vmatpush.msra.mxu1 %v249_v53  ;;  %v364_v26 = vld [vmem:[#allocation5 + $0x6d8] sm:$0xff]  ;;  %v166_v4 = vld [vmem:[#allocation5 + $0xa8] sm:$0xff] }
 0x147   :  { %787 = vmatpush.msra.mxu2 %v345_v54  ;;  %810 = vmatpush.msra.mxu3 %v441_v55  ;;  %v460_v27 = vld [vmem:[#allocation5 + $0x9d8] sm:$0xff]  ;;  %v262_v53 = vld [vmem:[#allocation5 + $0x3a8] sm:$0xff] }
 0x148   :  { %742 = vmatpush.msra.mxu0 %v147_v60  ;;  %765 = vmatpush.msra.mxu1 %v243_v5  ;;  %v358_v54 = vld [vmem:[#allocation5 + $0x6a8] sm:$0xff]  ;;  %v160_v60 = vld [vmem:[#allocation5 + $0x78] sm:$0xff] }
 0x149   :  { %788 = vmatpush.msra.mxu2 %v339_v9  ;;  %811 = vmatpush.msra.mxu3 %v435_v28  ;;  %v454_v55 = vld [vmem:[#allocation5 + $0x9a8] sm:$0xff]  ;;  %v256_v5 = vld [vmem:[#allocation5 + $0x378] sm:$0xff] }
 0x14a   :  { %819 = vmatpush.msrb.mxu0 %v238_v29  ;;  %842 = vmatpush.msrb.mxu1 %v334_v12  ;;  %v352_v9 = vld [vmem:[#allocation5 + $0x678] sm:$0xff]  ;;  %v154_v29 = vld [vmem:[#allocation5 + $0x48] sm:$0xff] }
 0x14b   :  { %865 = vmatpush.msrb.mxu2 %v430_v30  ;;  %888 = vmatpush.msrb.mxu3 %v526_v31  ;;  %v448_v28 = vld [vmem:[#allocation5 + $0x978] sm:$0xff]  ;;  %v250_v12 = vld [vmem:[#allocation5 + $0x348] sm:$0xff] }
 0x14c   :  { %743 = vmatmul.f32.vlgmr.msra.gmra.mxu0 %v1356_v17  ;;  %766 = vmatmul.f32.vlgmr.msra.gmra.mxu1 %v1359_v42  ;;  %v346_v30 = vld [vmem:[#allocation5 + $0x648] sm:$0xff] }
 0x14d   :  { %789 = vmatmul.f32.vlgmr.msra.gmra.mxu2 %v1362_v18  ;;  %812 = vmatmul.f32.vlgmr.msra.gmra.mxu3 %v1365_v21  ;;  %v442_v31 = vld [vmem:[#allocation5 + $0x948] sm:$0xff] }
 0x14e   :  { %820 = vmatpush.msrb.mxu0 %v232_v32  ;;  %843 = vmatpush.msrb.mxu1 %v328_v34  ;;  %v148_v32 = vld [vmem:[#allocation5 + $0x18] sm:$0xff] }
 0x14f   :  { %866 = vmatpush.msrb.mxu2 %v424_v35  ;;  %889 = vmatpush.msrb.mxu3 %v520_v38  ;;  %v244_v34 = vld [vmem:[#allocation5 + $0x318] sm:$0xff] }
 0x150   :  { %821 = vmatpush.msrb.mxu0 %v226_v19  ;;  %844 = vmatpush.msrb.mxu1 %v322_v40  ;;  %v340_v35 = vld [vmem:[#allocation5 + $0x618] sm:$0xff]  ;;  %v239_v19 = vld [vmem:[#allocation5 + $0x2f0] sm:$0xff] }
 0x151   :  { %867 = vmatpush.msrb.mxu2 %v418_v20  ;;  %890 = vmatpush.msrb.mxu3 %v514_v22  ;;  %v436_v38 = vld [vmem:[#allocation5 + $0x918] sm:$0xff]  ;;  %v335_v40 = vld [vmem:[#allocation5 + $0x5f0] sm:$0xff] }
 0x152   :  { %822 = vmatpush.msrb.mxu0 %v220_v41  ;;  %845 = vmatpush.msrb.mxu1 %v316_v25  ;;  %v431_v20 = vld [vmem:[#allocation5 + $0x8f0] sm:$0xff]  ;;  %v233_v41 = vld [vmem:[#allocation5 + $0x2c0] sm:$0xff] }
 0x153   :  { %868 = vmatpush.msrb.mxu2 %v412_v43  ;;  %891 = vmatpush.msrb.mxu3 %v508_v44  ;;  %v527_v22 = vld [vmem:[#allocation5 + $0xbf0] sm:$0xff]  ;;  %v329_v25 = vld [vmem:[#allocation5 + $0x5c0] sm:$0xff] }
 0x154   :  { %823 = vmatpush.msrb.mxu0 %v214_v45  ;;  %846 = vmatpush.msrb.mxu1 %v310_v46  ;;  %v425_v43 = vld [vmem:[#allocation5 + $0x8c0] sm:$0xff]  ;;  %v227_v45 = vld [vmem:[#allocation5 + $0x290] sm:$0xff] }
 0x155   :  { %869 = vmatpush.msrb.mxu2 %v406_v47  ;;  %892 = vmatpush.msrb.mxu3 %v502_v48  ;;  %v521_v44 = vld [vmem:[#allocation5 + $0xbc0] sm:$0xff]  ;;  %v323_v46 = vld [vmem:[#allocation5 + $0x590] sm:$0xff] }
 0x156   :  { %746 = vmatmul.f32.gmra.mxu0 %v1372_v33  ;;  %769 = vmatmul.f32.gmra.mxu1 %v1375_v36  ;;  %v419_v47 = vld [vmem:[#allocation5 + $0x890] sm:$0xff] }
 0x157   :  { %792 = vmatmul.f32.gmra.mxu2 %v1378_v37  ;;  %815 = vmatmul.f32.gmra.mxu3 %v1381_v39  ;;  %v515_v48 = vld [vmem:[#allocation5 + $0xb90] sm:$0xff] }
 0x158   :  { %824 = vmatpush.msrb.mxu0 %v208_v49  ;;  %847 = vmatpush.msrb.mxu1 %v304_v50  ;;  %v221_v49 = vld [vmem:[#allocation5 + $0x260] sm:$0xff] }
 0x159   :  { %870 = vmatpush.msrb.mxu2 %v400_v51  ;;  %893 = vmatpush.msrb.mxu3 %v496_v52  ;;  %v317_v50 = vld [vmem:[#allocation5 + $0x560] sm:$0xff] }
 0x15a   :  { %825 = vmatpush.msrb.mxu0 %v202_v56  ;;  %848 = vmatpush.msrb.mxu1 %v298_v57  ;;  %v413_v51 = vld [vmem:[#allocation5 + $0x860] sm:$0xff]  ;;  %v215_v56 = vld [vmem:[#allocation5 + $0x230] sm:$0xff] }
 0x15b   :  { %871 = vmatpush.msrb.mxu2 %v394_v58  ;;  %894 = vmatpush.msrb.mxu3 %v490_v59  ;;  %v509_v52 = vld [vmem:[#allocation5 + $0xb60] sm:$0xff]  ;;  %v311_v57 = vld [vmem:[#allocation5 + $0x530] sm:$0xff] }
 0x15c   :  { %826 = vmatpush.msrb.mxu0 %v196_v61  ;;  %849 = vmatpush.msrb.mxu1 %v292_v62  ;;  %v407_v58 = vld [vmem:[#allocation5 + $0x830] sm:$0xff]  ;;  %v209_v61 = vld [vmem:[#allocation5 + $0x200] sm:$0xff] }
 0x15d   :  { %872 = vmatpush.msrb.mxu2 %v388_v63  ;;  %895 = vmatpush.msrb.mxu3 %v484_v0  ;;  %v503_v59 = vld [vmem:[#allocation5 + $0xb30] sm:$0xff]  ;;  %v305_v62 = vld [vmem:[#allocation5 + $0x500] sm:$0xff] }
 0x15e   :  { %827 = vmatpush.msrb.mxu0 %v190_v1  ;;  %850 = vmatpush.msrb.mxu1 %v286_v2  ;;  %v401_v63 = vld [vmem:[#allocation5 + $0x800] sm:$0xff]  ;;  %v203_v1 = vld [vmem:[#allocation5 + $0x1d0] sm:$0xff] }
 0x15f   :  { %873 = vmatpush.msrb.mxu2 %v382_v3  ;;  %896 = vmatpush.msrb.mxu3 %v478_v7  ;;  %v497_v0 = vld [vmem:[#allocation5 + $0xb00] sm:$0xff]  ;;  %v299_v2 = vld [vmem:[#allocation5 + $0x4d0] sm:$0xff] }
 0x160   :  { %828 = vmatpush.msrb.mxu0 %v184_v6  ;;  %851 = vmatpush.msrb.mxu1 %v280_v8  ;;  %v395_v3 = vld [vmem:[#allocation5 + $0x7d0] sm:$0xff]  ;;  %v197_v6 = vld [vmem:[#allocation5 + $0x1a0] sm:$0xff] }
 0x161   :  { %874 = vmatpush.msrb.mxu2 %v376_v10  ;;  %897 = vmatpush.msrb.mxu3 %v472_v11  ;;  %v491_v7 = vld [vmem:[#allocation5 + $0xad0] sm:$0xff]  ;;  %v293_v8 = vld [vmem:[#allocation5 + $0x4a0] sm:$0xff] }
 0x162   :  { %829 = vmatpush.msrb.mxu0 %v178_v13  ;;  %852 = vmatpush.msrb.mxu1 %v274_v14  ;;  %v389_v10 = vld [vmem:[#allocation5 + $0x7a0] sm:$0xff]  ;;  %v191_v13 = vld [vmem:[#allocation5 + $0x170] sm:$0xff] }
 0x163   :  { %875 = vmatpush.msrb.mxu2 %v370_v15  ;;  %898 = vmatpush.msrb.mxu3 %v466_v16  ;;  %v485_v11 = vld [vmem:[#allocation5 + $0xaa0] sm:$0xff]  ;;  %v287_v14 = vld [vmem:[#allocation5 + $0x470] sm:$0xff] }
 0x164   :  { %830 = vmatpush.msrb.mxu0 %v172_v23  ;;  %853 = vmatpush.msrb.mxu1 %v268_v24  ;;  %v383_v15 = vld [vmem:[#allocation5 + $0x770] sm:$0xff]  ;;  %v185_v23 = vld [vmem:[#allocation5 + $0x140] sm:$0xff] }
 0x165   :  { %876 = vmatpush.msrb.mxu2 %v364_v26  ;;  %899 = vmatpush.msrb.mxu3 %v460_v27  ;;  %v479_v16 = vld [vmem:[#allocation5 + $0xa70] sm:$0xff]  ;;  %v281_v24 = vld [vmem:[#allocation5 + $0x440] sm:$0xff] }
 0x166   :  { %831 = vmatpush.msrb.mxu0 %v166_v4  ;;  %854 = vmatpush.msrb.mxu1 %v262_v53  ;;  %v377_v26 = vld [vmem:[#allocation5 + $0x740] sm:$0xff]  ;;  %v179_v4 = vld [vmem:[#allocation5 + $0x110] sm:$0xff] }
 0x167   :  { %877 = vmatpush.msrb.mxu2 %v358_v54  ;;  %900 = vmatpush.msrb.mxu3 %v454_v55  ;;  %v473_v27 = vld [vmem:[#allocation5 + $0xa40] sm:$0xff]  ;;  %v275_v53 = vld [vmem:[#allocation5 + $0x410] sm:$0xff] }
 0x168   :  { %832 = vmatpush.msrb.mxu0 %v160_v60  ;;  %855 = vmatpush.msrb.mxu1 %v256_v5  ;;  %v371_v54 = vld [vmem:[#allocation5 + $0x710] sm:$0xff]  ;;  %v173_v60 = vld [vmem:[#allocation5 + $0xe0] sm:$0xff] }
 0x169   :  { %878 = vmatpush.msrb.mxu2 %v352_v9  ;;  %901 = vmatpush.msrb.mxu3 %v448_v28  ;;  %v467_v55 = vld [vmem:[#allocation5 + $0xa10] sm:$0xff]  ;;  %v269_v5 = vld [vmem:[#allocation5 + $0x3e0] sm:$0xff] }
 0x16a   :  { %833 = vmatpush.msrb.mxu0 %v154_v29  ;;  %856 = vmatpush.msrb.mxu1 %v250_v12  ;;  %v365_v9 = vld [vmem:[#allocation5 + $0x6e0] sm:$0xff]  ;;  %v167_v29 = vld [vmem:[#allocation5 + $0xb0] sm:$0xff] }
 0x16b   :  { %879 = vmatpush.msrb.mxu2 %v346_v30  ;;  %902 = vmatpush.msrb.mxu3 %v442_v31  ;;  %v461_v28 = vld [vmem:[#allocation5 + $0x9e0] sm:$0xff]  ;;  %v263_v12 = vld [vmem:[#allocation5 + $0x3b0] sm:$0xff] }
 0x16c   :  { %834 = vmatpush.msrb.mxu0 %v148_v32  ;;  %857 = vmatpush.msrb.mxu1 %v244_v34  ;;  %v359_v30 = vld [vmem:[#allocation5 + $0x6b0] sm:$0xff]  ;;  %v161_v32 = vld [vmem:[#allocation5 + $0x80] sm:$0xff] }
 0x16d   :  { %880 = vmatpush.msrb.mxu2 %v340_v35  ;;  %903 = vmatpush.msrb.mxu3 %v436_v38  ;;  %v455_v31 = vld [vmem:[#allocation5 + $0x9b0] sm:$0xff]  ;;  %v257_v34 = vld [vmem:[#allocation5 + $0x380] sm:$0xff] }
 0x16e   :  { %835 = vmatmul.f32.vlgmr.msrb.gmra.mxu0 %v1356_v17  ;;  %858 = vmatmul.f32.vlgmr.msrb.gmra.mxu1 %v1359_v42  ;;  %v353_v35 = vld [vmem:[#allocation5 + $0x680] sm:$0xff] }
 0x16f   :  { %881 = vmatmul.f32.vlgmr.msrb.gmra.mxu2 %v1362_v18  ;;  %904 = vmatmul.f32.vlgmr.msrb.gmra.mxu3 %v1365_v21  ;;  %v449_v38 = vld [vmem:[#allocation5 + $0x980] sm:$0xff] }
 0x170   :  { %911 = vmatpush.msra.mxu0 %v239_v19  ;;  %934 = vmatpush.msra.mxu1 %v335_v40  ;;  %v155_v19 = vld [vmem:[#allocation5 + $0x50] sm:$0xff] }
 0x171   :  { %957 = vmatpush.msra.mxu2 %v431_v20  ;;  %980 = vmatpush.msra.mxu3 %v527_v22  ;;  %v251_v40 = vld [vmem:[#allocation5 + $0x350] sm:$0xff] }
 0x172   :  { %912 = vmatpush.msra.mxu0 %v233_v41  ;;  %935 = vmatpush.msra.mxu1 %v329_v25  ;;  %v347_v20 = vld [vmem:[#allocation5 + $0x650] sm:$0xff]  ;;  %v149_v41 = vld [vmem:[#allocation5 + $0x20] sm:$0xff] }
 0x173   :  { %958 = vmatpush.msra.mxu2 %v425_v43  ;;  %981 = vmatpush.msra.mxu3 %v521_v44  ;;  %v443_v22 = vld [vmem:[#allocation5 + $0x950] sm:$0xff]  ;;  %v245_v25 = vld [vmem:[#allocation5 + $0x320] sm:$0xff] }
 0x174   :  { %913 = vmatpush.msra.mxu0 %v227_v45  ;;  %936 = vmatpush.msra.mxu1 %v323_v46  ;;  %v341_v43 = vld [vmem:[#allocation5 + $0x620] sm:$0xff]  ;;  %v240_v45 = vld [vmem:[#allocation5 + $0x2f8] sm:$0xff] }
 0x175   :  { %959 = vmatpush.msra.mxu2 %v419_v47  ;;  %982 = vmatpush.msra.mxu3 %v515_v48  ;;  %v437_v44 = vld [vmem:[#allocation5 + $0x920] sm:$0xff]  ;;  %v336_v46 = vld [vmem:[#allocation5 + $0x5f8] sm:$0xff] }
 0x176   :  { %914 = vmatpush.msra.mxu0 %v221_v49  ;;  %937 = vmatpush.msra.mxu1 %v317_v50  ;;  %v432_v47 = vld [vmem:[#allocation5 + $0x8f8] sm:$0xff]  ;;  %v234_v49 = vld [vmem:[#allocation5 + $0x2c8] sm:$0xff] }
 0x177   :  { %960 = vmatpush.msra.mxu2 %v413_v51  ;;  %983 = vmatpush.msra.mxu3 %v509_v52  ;;  %v528_v48 = vld [vmem:[#allocation5 + $0xbf8] sm:$0xff]  ;;  %v330_v50 = vld [vmem:[#allocation5 + $0x5c8] sm:$0xff] }
 0x178   :  { %838 = vmatmul.f32.gmra.mxu0 %v1372_v33  ;;  %861 = vmatmul.f32.gmra.mxu1 %v1375_v36  ;;  %v426_v51 = vld [vmem:[#allocation5 + $0x8c8] sm:$0xff] }
 0x179   :  { %884 = vmatmul.f32.gmra.mxu2 %v1378_v37  ;;  %907 = vmatmul.f32.gmra.mxu3 %v1381_v39  ;;  %v522_v52 = vld [vmem:[#allocation5 + $0xbc8] sm:$0xff] }
 0x17a   :  { %915 = vmatpush.msra.mxu0 %v215_v56  ;;  %938 = vmatpush.msra.mxu1 %v311_v57  ;;  %v228_v56 = vld [vmem:[#allocation5 + $0x298] sm:$0xff] }
 0x17b   :  { %961 = vmatpush.msra.mxu2 %v407_v58  ;;  %984 = vmatpush.msra.mxu3 %v503_v59  ;;  %v324_v57 = vld [vmem:[#allocation5 + $0x598] sm:$0xff] }
 0x17c   :  { %916 = vmatpush.msra.mxu0 %v209_v61  ;;  %939 = vmatpush.msra.mxu1 %v305_v62  ;;  %v420_v58 = vld [vmem:[#allocation5 + $0x898] sm:$0xff]  ;;  %v222_v61 = vld [vmem:[#allocation5 + $0x268] sm:$0xff] }
 0x17d   :  { %962 = vmatpush.msra.mxu2 %v401_v63  ;;  %985 = vmatpush.msra.mxu3 %v497_v0  ;;  %v516_v59 = vld [vmem:[#allocation5 + $0xb98] sm:$0xff]  ;;  %v318_v62 = vld [vmem:[#allocation5 + $0x568] sm:$0xff] }
 0x17e   :  { %917 = vmatpush.msra.mxu0 %v203_v1  ;;  %940 = vmatpush.msra.mxu1 %v299_v2  ;;  %v414_v63 = vld [vmem:[#allocation5 + $0x868] sm:$0xff]  ;;  %v1415_v1 = vld [vmem:[#allocation7] sm:$0x3f]  ;;  %v216_v2 = vld [vmem:[#allocation5 + $0x238] sm:$0xff] }
 0x17f   :  { %963 = vmatpush.msra.mxu2 %v395_v3  ;;  %986 = vmatpush.msra.mxu3 %v491_v7  ;;  %v510_v0 = vld [vmem:[#allocation5 + $0xb68] sm:$0xff]  ;;  %v312_v3 = vld [vmem:[#allocation5 + $0x538] sm:$0xff] }
 0x180   :  { %918 = vmatpush.msra.mxu0 %v197_v6  ;;  %941 = vmatpush.msra.mxu1 %v293_v8  ;;  %v408_v7 = vld [vmem:[#allocation5 + $0x838] sm:$0xff]  ;;  %v210_v8 = vld [vmem:[#allocation5 + $0x208] sm:$0xff] }
 0x181   :  { %964 = vmatpush.msra.mxu2 %v389_v10  ;;  %987 = vmatpush.msra.mxu3 %v485_v11  ;;  %v504_v6 = vld [vmem:[#allocation5 + $0xb38] sm:$0xff]  ;;  %v531_v10 = vperm.slane %v1415_v1, 0  ;;  %v306_v11 = vld [vmem:[#allocation5 + $0x508] sm:$0xff] }
 0x182   :  { %919 = vmatpush.msra.mxu0 %v191_v13  ;;  %942 = vmatpush.msra.mxu1 %v287_v14  ;;  %v402_v13 = vld [vmem:[#allocation5 + $0x808] sm:$0xff] }
 0x183   :  { %965 = vmatpush.msra.mxu2 %v383_v15  ;;  %988 = vmatpush.msra.mxu3 %v479_v16  ;;  %v498_v14 = vld [vmem:[#allocation5 + $0xb08] sm:$0xff]  ;;  %v204_v15 = vld [vmem:[#allocation5 + $0x1d8] sm:$0xff] }
 0x184   :  { %920 = vmatpush.msra.mxu0 %v185_v23  ;;  %943 = vmatpush.msra.mxu1 %v281_v24  ;;  %v300_v23 = vld [vmem:[#allocation5 + $0x4d8] sm:$0xff] }
 0x185   :  { %966 = vmatpush.msra.mxu2 %v377_v26  ;;  %989 = vmatpush.msra.mxu3 %v473_v27  ;;  %v396_v24 = vld [vmem:[#allocation5 + $0x7d8] sm:$0xff]  ;;  %v198_v27 = vld [vmem:[#allocation5 + $0x1a8] sm:$0xff] }
 0x186   :  { %921 = vmatpush.msra.mxu0 %v179_v4  ;;  %944 = vmatpush.msra.mxu1 %v275_v53  ;;  %v492_v26 = vld [vmem:[#allocation5 + $0xad8] sm:$0xff]  ;;  %v294_v53 = vld [vmem:[#allocation5 + $0x4a8] sm:$0xff] }
 0x187   :  { %967 = vmatpush.msra.mxu2 %v371_v54  ;;  %990 = vmatpush.msra.mxu3 %v467_v55  ;;  %v390_v54 = vld [vmem:[#allocation5 + $0x7a8] sm:$0xff] }
 0x188   :  { %922 = vmatpush.msra.mxu0 %v173_v60  ;;  %945 = vmatpush.msra.mxu1 %v269_v5  ;;  %v486_v55 = vld [vmem:[#allocation5 + $0xaa8] sm:$0xff]  ;;  %v192_v60 = vld [vmem:[#allocation5 + $0x178] sm:$0xff] }
 0x189   :  { %968 = vmatpush.msra.mxu2 %v365_v9  ;;  %991 = vmatpush.msra.mxu3 %v461_v28  ;;  %v288_v5 = vld [vmem:[#allocation5 + $0x478] sm:$0xff] }
 0x18a   :  { %923 = vmatpush.msra.mxu0 %v167_v29  ;;  %946 = vmatpush.msra.mxu1 %v263_v12  ;;  %v384_v9 = vld [vmem:[#allocation5 + $0x778] sm:$0xff]  ;;  %v186_v12 = vld [vmem:[#allocation5 + $0x148] sm:$0xff] }
 0x18b   :  { %969 = vmatpush.msra.mxu2 %v359_v30  ;;  %992 = vmatpush.msra.mxu3 %v455_v31  ;;  %v480_v29 = vld [vmem:[#allocation5 + $0xa78] sm:$0xff]  ;;  %v282_v31 = vld [vmem:[#allocation5 + $0x448] sm:$0xff] }
 0x18c   :  { %924 = vmatpush.msra.mxu0 %v161_v32  ;;  %947 = vmatpush.msra.mxu1 %v257_v34  ;;  %v378_v32 = vld [vmem:[#allocation5 + $0x748] sm:$0xff] }
 0x18d   :  { %970 = vmatpush.msra.mxu2 %v353_v35  ;;  %993 = vmatpush.msra.mxu3 %v449_v38  ;;  %v474_v35 = vld [vmem:[#allocation5 + $0xa48] sm:$0xff]  ;;  %v180_v38 = vld [vmem:[#allocation5 + $0x118] sm:$0xff] }
 0x18e   :  { %925 = vmatpush.msra.mxu0 %v155_v19  ;;  %948 = vmatpush.msra.mxu1 %v251_v40  ;;  %v276_v40 = vld [vmem:[#allocation5 + $0x418] sm:$0xff] }
 0x18f   :  { %971 = vmatpush.msra.mxu2 %v347_v20  ;;  %994 = vmatpush.msra.mxu3 %v443_v22  ;;  %v372_v20 = vld [vmem:[#allocation5 + $0x718] sm:$0xff] }
 0x190   :  { %926 = vmatpush.msra.mxu0 %v149_v41  ;;  %949 = vmatpush.msra.mxu1 %v245_v25  ;;  %v468_v41 = vld [vmem:[#allocation5 + $0xa18] sm:$0xff]  ;;  %v174_v25 = vld [vmem:[#allocation5 + $0xe8] sm:$0xff] }
 0x191   :  { %972 = vmatpush.msra.mxu2 %v341_v43  ;;  %995 = vmatpush.msra.mxu3 %v437_v44 }
 0x192   :  { %927 = vmatmul.f32.vlgmr.msra.gmra.mxu0 %v1356_v17  ;;  %950 = vmatmul.f32.vlgmr.msra.gmra.mxu1 %v1359_v42 }
 0x193   :  { %973 = vmatmul.f32.vlgmr.msra.gmra.mxu2 %v1362_v18  ;;  %996 = vmatmul.f32.vlgmr.msra.gmra.mxu3 %v1365_v21 }
 0x194   :  { %1003 = vmatpush.msrb.mxu0 %v240_v45  ;;  %1026 = vmatpush.msrb.mxu1 %v336_v46  ;;  %v270_v45 = vld [vmem:[#allocation5 + $0x3e8] sm:$0xff] }
 0x195   :  { %1049 = vmatpush.msrb.mxu2 %v432_v47  ;;  %1072 = vmatpush.msrb.mxu3 %v528_v48  ;;  %v366_v46 = vld [vmem:[#allocation5 + $0x6e8] sm:$0xff]  ;;  %v168_v48 = vld [vmem:[#allocation5 + $0xb8] sm:$0xff] }
 0x196   :  { %1004 = vmatpush.msrb.mxu0 %v234_v49  ;;  %1027 = vmatpush.msrb.mxu1 %v330_v50  ;;  %v462_v47 = vld [vmem:[#allocation5 + $0x9e8] sm:$0xff]  ;;  %v264_v50 = vld [vmem:[#allocation5 + $0x3b8] sm:$0xff] }
 0x197   :  { %1050 = vmatpush.msrb.mxu2 %v426_v51  ;;  %1073 = vmatpush.msrb.mxu3 %v522_v52  ;;  %v360_v51 = vld [vmem:[#allocation5 + $0x6b8] sm:$0xff] }
 0x198   :  { %1005 = vmatpush.msrb.mxu0 %v228_v56  ;;  %1028 = vmatpush.msrb.mxu1 %v324_v57  ;;  %v456_v52 = vld [vmem:[#allocation5 + $0x9b8] sm:$0xff]  ;;  %v162_v56 = vld [vmem:[#allocation5 + $0x88] sm:$0xff] }
 0x199   :  { %1051 = vmatpush.msrb.mxu2 %v420_v58  ;;  %1074 = vmatpush.msrb.mxu3 %v516_v59  ;;  %v258_v57 = vld [vmem:[#allocation5 + $0x388] sm:$0xff] }
 0x19a   :  { %1006 = vmatpush.msrb.mxu0 %v222_v61  ;;  %1029 = vmatpush.msrb.mxu1 %v318_v62  ;;  %v354_v58 = vld [vmem:[#allocation5 + $0x688] sm:$0xff]  ;;  %v156_v62 = vld [vmem:[#allocation5 + $0x58] sm:$0xff] }
 0x19b   :  { %1052 = vmatpush.msrb.mxu2 %v414_v63  ;;  %1075 = vmatpush.msrb.mxu3 %v510_v0  ;;  %v450_v61 = vld [vmem:[#allocation5 + $0x988] sm:$0xff]  ;;  %v252_v0 = vld [vmem:[#allocation5 + $0x358] sm:$0xff] }
 0x19c   :  { %930 = vmatmul.f32.gmra.mxu0 %v1372_v33  ;;  %953 = vmatmul.f32.gmra.mxu1 %v1375_v36 }
 0x19d   :  { %976 = vmatmul.f32.gmra.mxu2 %v1378_v37  ;;  %999 = vmatmul.f32.gmra.mxu3 %v1381_v39 }
 0x19e   :  { %1007 = vmatpush.msrb.mxu0 %v216_v2  ;;  %1030 = vmatpush.msrb.mxu1 %v312_v3  ;;  %v348_v2 = vld [vmem:[#allocation5 + $0x658] sm:$0xff] }
 0x19f   :  { %1053 = vmatpush.msrb.mxu2 %v408_v7  ;;  %v560_v16 = vpop.f32.mrf.mxu0  ;;  %1076 = vmatpush.msrb.mxu3 %v504_v6  ;;  %v583_v28 = vpop.f32.mrf.mxu1  ;;  %v444_v7 = vld [vmem:[#allocation5 + $0x958] sm:$0xff]  ;;  %v150_v6 = vld [vmem:[#allocation5 + $0x28] sm:$0xff] }
 0x1a0   :  { %1008 = vmatpush.msrb.mxu0 %v210_v8  ;;  %1031 = vmatpush.msrb.mxu1 %v306_v11  ;;  %v561_v4 = vadd.f32 %v560_v16, %v531_v10  ;;  %v246_v11 = vld [vmem:[#allocation5 + $0x328] sm:$0xff] }
 0x1a1   :  { %1054 = vmatpush.msrb.mxu2 %v402_v13  ;;  %1077 = vmatpush.msrb.mxu3 %v498_v14  ;;  %v342_v13 = vld [vmem:[#allocation5 + $0x628] sm:$0xff] }
 0x1a2   :  { %1009 = vmatpush.msrb.mxu0 %v204_v15  ;;  %1032 = vmatpush.msrb.mxu1 %v300_v23  ;;  %v584_v30 = vadd.f32 %v583_v28, %v561_v4  ;;  %v438_v15 = vld [vmem:[#allocation5 + $0x928] sm:$0xff] }
 0x1a3   :  { %1055 = vmatpush.msrb.mxu2 %v396_v24  ;;  %1078 = vmatpush.msrb.mxu3 %v492_v26 }
 0x1a4   :  { %1010 = vmatpush.msrb.mxu0 %v198_v27  ;;  %1033 = vmatpush.msrb.mxu1 %v294_v53 }
 0x1a5   :  { %1056 = vmatpush.msrb.mxu2 %v390_v54  ;;  %1079 = vmatpush.msrb.mxu3 %v486_v55 }
 0x1a6   :  { %1011 = vmatpush.msrb.mxu0 %v192_v60  ;;  %v606_v34 = vpop.f32.mrf.mxu2  ;;  %1034 = vmatpush.msrb.mxu1 %v288_v5  ;;  %v629_v22 = vpop.f32.mrf.mxu3 }
 0x1a7   :  { %1057 = vmatpush.msrb.mxu2 %v384_v9  ;;  %v607_v19 = vadd.f32 %v606_v34, %v584_v30  ;;  %1080 = vmatpush.msrb.mxu3 %v480_v29  ;;  %v533_v29 = vperm.slane %v1415_v1, 2 }
 0x1a8   :  { %1012 = vmatpush.msrb.mxu0 %v186_v12  ;;  %1035 = vmatpush.msrb.mxu1 %v282_v31 }
 0x1a9   :  { %1058 = vmatpush.msrb.mxu2 %v378_v32  ;;  %v630_v43 = vadd.f32 %v629_v22, %v607_v19  ;;  %v563_v44 = vpop.f32.mrf.mxu0  ;;  %1081 = vmatpush.msrb.mxu3 %v474_v35  ;;  %v586_v59 = vpop.f32.mrf.mxu1 }
 0x1aa   :  { %1013 = vmatpush.msrb.mxu0 %v180_v38  ;;  %1036 = vmatpush.msrb.mxu1 %v276_v40  ;;  %v564_v49 = vadd.f32 %v563_v44, %v531_v10  ;;  %v532_v10 = vperm.slane %v1415_v1, 1 }
 0x1ab   :  { %1059 = vmatpush.msrb.mxu2 %v372_v20  ;;  %1095 = vst [vmem:[#allocation8] sm:$0xff] %v630_v43  ;;  %1082 = vmatpush.msrb.mxu3 %v468_v41 }
 0x1ac   :  { %1014 = vmatpush.msrb.mxu0 %v174_v25  ;;  %1037 = vmatpush.msrb.mxu1 %v270_v45  ;;  %v587_v63 = vadd.f32 %v586_v59, %v564_v49  ;;  %v534_v25 = vperm.slane %v1415_v1, 3 }
 0x1ad   :  { %1060 = vmatpush.msrb.mxu2 %v366_v46  ;;  %1083 = vmatpush.msrb.mxu3 %v462_v47 }
 0x1ae   :  { %1015 = vmatpush.msrb.mxu0 %v168_v48  ;;  %1038 = vmatpush.msrb.mxu1 %v264_v50 }
 0x1af   :  { %1061 = vmatpush.msrb.mxu2 %v360_v51  ;;  %1084 = vmatpush.msrb.mxu3 %v456_v52 }
 0x1b0   :  { %1016 = vmatpush.msrb.mxu0 %v162_v56  ;;  %v609_v3 = vpop.f32.mrf.mxu2  ;;  %1039 = vmatpush.msrb.mxu1 %v258_v57  ;;  %v632_v14 = vpop.f32.mrf.mxu3 }
 0x1b1   :  { %1062 = vmatpush.msrb.mxu2 %v354_v58  ;;  %v610_v8 = vadd.f32 %v609_v3, %v587_v63  ;;  %1085 = vmatpush.msrb.mxu3 %v450_v61  ;;  %v535_v63 = vperm.slane %v1415_v1, 4 }
 0x1b2   :  { %1017 = vmatpush.msrb.mxu0 %v156_v62  ;;  %1040 = vmatpush.msrb.mxu1 %v252_v0 }
 0x1b3   :  { %1063 = vmatpush.msrb.mxu2 %v348_v2  ;;  %v633_v16 = vadd.f32 %v632_v14, %v610_v8  ;;  %v652_v23 = vpop.f32.mrf.mxu0  ;;  %1086 = vmatpush.msrb.mxu3 %v444_v7  ;;  %v675_v26 = vpop.f32.mrf.mxu1 }
 0x1b4   :  { %1018 = vmatpush.msrb.mxu0 %v150_v6  ;;  %1041 = vmatpush.msrb.mxu1 %v246_v11  ;;  %v653_v24 = vadd.f32 %v652_v23, %v532_v10 }
 0x1b5   :  { %1064 = vmatpush.msrb.mxu2 %v342_v13  ;;  %1101 = vst [vmem:[#allocation8 + $0x30] sm:$0xff] %v633_v16  ;;  %1087 = vmatpush.msrb.mxu3 %v438_v15 }
 0x1b6   :  { %1019 = vmatmul.f32.vlgmr.msrb.gmra.mxu0 %v1356_v17  ;;  %1042 = vmatmul.f32.vlgmr.msrb.gmra.mxu1 %v1359_v42  ;;  %v676_v27 = vadd.f32 %v675_v26, %v653_v24 }
 0x1b7   :  { %1065 = vmatmul.f32.vlgmr.msrb.gmra.mxu2 %v1362_v18  ;;  %1088 = vmatmul.f32.vlgmr.msrb.gmra.mxu3 %v1365_v21 }
 0x1ba   :  { %v698_v4 = vpop.f32.mrf.mxu2  ;;  %v721_v54 = vpop.f32.mrf.mxu3 }
 0x1bb   :  { %v699_v53 = vadd.f32 %v698_v4, %v676_v27  ;;  %v536_v4 = vperm.slane %v1415_v1, 5 }
 0x1bd   :  { %v722_v55 = vadd.f32 %v721_v54, %v699_v53  ;;  %v655_v60 = vpop.f32.mrf.mxu0  ;;  %v678_v42 = vpop.f32.mrf.mxu1 }
 0x1be   :  { %1022 = vmatmul.f32.gmra.mxu0 %v1372_v33  ;;  %1045 = vmatmul.f32.gmra.mxu1 %v1375_v36  ;;  %v656_v17 = vadd.f32 %v655_v60, %v532_v10 }
 0x1bf   :  { %1068 = vmatmul.f32.gmra.mxu2 %v1378_v37  ;;  %1096 = vst [vmem:[#allocation8 + $0x8] sm:$0xff] %v722_v55  ;;  %1091 = vmatmul.f32.gmra.mxu3 %v1381_v39 }
 0x1c0   :  { %v679_v18 = vadd.f32 %v678_v42, %v656_v17 }
 0x1c4   :  { %v701_v21 = vpop.f32.mrf.mxu2  ;;  %v724_v9 = vpop.f32.mrf.mxu3 }
 0x1c5   :  { %v702_v5 = vadd.f32 %v701_v21, %v679_v18 }
 0x1c7   :  { %v725_v28 = vadd.f32 %v724_v9, %v702_v5 }
 0x1c9   :  { %1102 = vst [vmem:[#allocation8 + $0x38] sm:$0xff] %v725_v28  ;;  %v744_v12 = vpop.f32.mrf.mxu0  ;;  %v767_v33 = vpop.f32.mrf.mxu1 }
 0x1ca   :  { %v745_v30 = vadd.f32 %v744_v12, %v533_v29 }
 0x1cc   :  { %v768_v31 = vadd.f32 %v767_v33, %v745_v30 }
 0x1d0   :  { %v790_v36 = vpop.f32.mrf.mxu2  ;;  %v813_v37 = vpop.f32.mrf.mxu3 }
 0x1d1   :  { %v791_v32 = vadd.f32 %v790_v36, %v768_v31 }
 0x1d3   :  { %v814_v34 = vadd.f32 %v813_v37, %v791_v32  ;;  %v747_v35 = vpop.f32.mrf.mxu0  ;;  %v770_v38 = vpop.f32.mrf.mxu1 }
 0x1d4   :  { %v748_v39 = vadd.f32 %v747_v35, %v533_v29 }
 0x1d5   :  { %1097 = vst [vmem:[#allocation8 + $0x10] sm:$0xff] %v814_v34 }
 0x1d6   :  { %v771_v19 = vadd.f32 %v770_v38, %v748_v39 }
 0x1da   :  { %v793_v40 = vpop.f32.mrf.mxu2  ;;  %v816_v22 = vpop.f32.mrf.mxu3 }
 0x1db   :  { %v794_v20 = vadd.f32 %v793_v40, %v771_v19 }
 0x1dd   :  { %v817_v41 = vadd.f32 %v816_v22, %v794_v20 }
 0x1df   :  { %1103 = vst [vmem:[#allocation8 + $0x40] sm:$0xff] %v817_v41 }
 0x1eb   :  { %v836_v43 = vpop.f32.mrf.mxu0  ;;  %v859_v45 = vpop.f32.mrf.mxu1 }
 0x1ec   :  { %v837_v44 = vadd.f32 %v836_v43, %v534_v25 }
 0x1ee   :  { %v860_v46 = vadd.f32 %v859_v45, %v837_v44 }
 0x1f2   :  { %v882_v47 = vpop.f32.mrf.mxu2  ;;  %v905_v49 = vpop.f32.mrf.mxu3 }
 0x1f3   :  { %v883_v48 = vadd.f32 %v882_v47, %v860_v46 }
 0x1f5   :  { %v906_v50 = vadd.f32 %v905_v49, %v883_v48  ;;  %v839_v51 = vpop.f32.mrf.mxu0  ;;  %v862_v56 = vpop.f32.mrf.mxu1 }
 0x1f6   :  { %v840_v52 = vadd.f32 %v839_v51, %v534_v25 }
 0x1f7   :  { %1098 = vst [vmem:[#allocation8 + $0x18] sm:$0xff] %v906_v50 }
 0x1f8   :  { %v863_v57 = vadd.f32 %v862_v56, %v840_v52 }
 0x1fc   :  { %v885_v58 = vpop.f32.mrf.mxu2  ;;  %v908_v61 = vpop.f32.mrf.mxu3 }
 0x1fd   :  { %v886_v59 = vadd.f32 %v885_v58, %v863_v57 }
 0x1ff   :  { %v909_v62 = vadd.f32 %v908_v61, %v886_v59 }
 0x201   :  { %1104 = vst [vmem:[#allocation8 + $0x48] sm:$0xff] %v909_v62 }
 0x20f   :  { %v928_v0 = vpop.f32.mrf.mxu0  ;;  %v951_v3 = vpop.f32.mrf.mxu1 }
 0x210   :  { %v929_v2 = vadd.f32 %v928_v0, %v535_v63 }
 0x212   :  { %v952_v7 = vadd.f32 %v951_v3, %v929_v2 }
 0x216   :  { %v974_v6 = vpop.f32.mrf.mxu2  ;;  %v997_v10 = vpop.f32.mrf.mxu3 }
 0x217   :  { %v975_v8 = vadd.f32 %v974_v6, %v952_v7 }
 0x219   :  { %v998_v11 = vadd.f32 %v997_v10, %v975_v8  ;;  %v931_v13 = vpop.f32.mrf.mxu0  ;;  %v954_v15 = vpop.f32.mrf.mxu1 }
 0x21a   :  { %v932_v14 = vadd.f32 %v931_v13, %v535_v63 }
 0x21b   :  { %1099 = vst [vmem:[#allocation8 + $0x20] sm:$0xff] %v998_v11 }
 0x21c   :  { %v955_v16 = vadd.f32 %v954_v15, %v932_v14 }
 0x220   :  { %v977_v23 = vpop.f32.mrf.mxu2  ;;  %v1000_v26 = vpop.f32.mrf.mxu3 }
 0x221   :  { %v978_v24 = vadd.f32 %v977_v23, %v955_v16 }
 0x223   :  { %v1001_v27 = vadd.f32 %v1000_v26, %v978_v24 }
 0x225   :  { %1105 = vst [vmem:[#allocation8 + $0x50] sm:$0xff] %v1001_v27 }
 0x233   :  { %v1020_v53 = vpop.f32.mrf.mxu0  ;;  %v1043_v55 = vpop.f32.mrf.mxu1 }
 0x234   :  { %v1021_v54 = vadd.f32 %v1020_v53, %v536_v4 }
 0x236   :  { %v1044_v60 = vadd.f32 %v1043_v55, %v1021_v54 }
 0x23a   :  { %v1066_v17 = vpop.f32.mrf.mxu2  ;;  %v1089_v18 = vpop.f32.mrf.mxu3 }
 0x23b   :  { %v1067_v42 = vadd.f32 %v1066_v17, %v1044_v60  ;;  %v1023_v21 = vpop.f32.mrf.mxu0  ;;  %v1046_v28 = vpop.f32.mrf.mxu1 }
 0x23c   :  { %v1024_v9 = vadd.f32 %v1023_v21, %v536_v4 }
 0x23d   :  { %v1090_v5 = vadd.f32 %v1089_v18, %v1067_v42 }
 0x23e   :  { %v1047_v29 = vadd.f32 %v1046_v28, %v1024_v9 }
 0x23f   :  { %1100 = vst [vmem:[#allocation8 + $0x28] sm:$0xff] %v1090_v5 }
 0x242   :  { %v1069_v12 = vpop.f32.mrf.mxu2  ;;  %v1092_v30 = vpop.f32.mrf.mxu3 }
 0x243   :  { %v1070_v1 = vadd.f32 %v1069_v12, %v1047_v29 }
 0x245   :  { %v1093_v33 = vadd.f32 %v1092_v30, %v1070_v1 }
 0x247   :  { %1106 = vst [vmem:[#allocation8 + $0x58] sm:$0xff] %v1093_v33 }
 0x248   :  { %1119 = dma.vmem_to_hbm [thread:$0]  %s1112_s29, 1536, %s1114_s5, [#allocation4], %s1245_s20, %s1245_s20, %s1246_s21  }
 0x249   :  { %1242 = dma.done.wait [#allocation4], 1536  }
 0x24a   :  { %1243 = vsyncadd [#allocation4], 4294965760 }
 0x24b   :  { %1124 = vsyncpa [#allocation3], 1 }
 0x24c   :  { %1125 = vsyncpa [#allocation6], 1 }
 0x24d   :  { %1126 = vsyncpa [#allocation4], 1 }

</bundles_post_ra>
